<compile_context>
chip_gen: v7x
topology: tpu7x:2x2x1
jax: 0.10.0
libtpu: 0.0.40
codegen_flags: <defaults>
</compile_context>

<pallas_src>
import numpy as np
import jax
import jax.numpy as jnp
from jax.experimental import pallas as pl
from jax.experimental.pallas import tpu as pltpu


def _bilstm_chunk_kernel(pre_f_ref, pre_b_ref, wrec_ref, h_sum_ref,
                         h_ref, c_ref):
    """One time chunk of the fused bidirectional layer-0 LSTM recurrence.

    pre_f_ref : (Ct, B, 4H) forward pre-activations, gate order (i, f, o, g),
                time chunk c (natural order).
    pre_b_ref : (Ct, B, 4H) backward pre-activations, gate order (i, f, o, g),
                time chunk nc-1-c (natural order; walked in reverse in-kernel).
    wrec_ref  : (2H, 8H)    block-diagonal fused recurrent weights,
                rows [h_f | h_b], cols [fwd(i,f,o,g) | bwd(i,f,o,g)].
    h_sum_ref : (B, H)      output, written on the last chunk: h_f + h_b.
    h_ref     : (B, 2H)     VMEM scratch carry [h_f | h_b].
    c_ref     : (B, 2H)     VMEM scratch carry [c_f | c_b].
    """
    Ct, B, H4 = pre_f_ref.shape
    H = H4 // 4
    chunk = pl.program_id(0)

    @pl.when(chunk == 0)
    def _():
        h_ref[...] = jnp.zeros_like(h_ref)
        c_ref[...] = jnp.zeros_like(c_ref)

    # Constant weights: loaded once per chunk, live across the recurrence.
    w_rec = wrec_ref[...]                                   # (2H, 8H)

    def step(t, carry):
        h, c_f, c_b = carry
        # Single fused MXU dot for BOTH directions per time step.
        g = jnp.dot(h, w_rec, preferred_element_type=jnp.float32)   # (B, 8H)
        g_f = g[:, :H4] + pre_f_ref[t]                      # forward, time t
        g_b = g[:, H4:] + pre_b_ref[Ct - 1 - t]             # backward, reversed
        # Gate order (i, f, o, g): one sigmoid over 3H + one tanh per direction.
        s_f = jax.nn.sigmoid(g_f[:, :3 * H])
        s_b = jax.nn.sigmoid(g_b[:, :3 * H])
        gg_f = jnp.tanh(g_f[:, 3 * H:])
        gg_b = jnp.tanh(g_b[:, 3 * H:])
        c_f = s_f[:, H:2 * H] * c_f + s_f[:, :H] * gg_f
        c_b = s_b[:, H:2 * H] * c_b + s_b[:, :H] * gg_b
        h_f = s_f[:, 2 * H:3 * H] * jnp.tanh(c_f)
        h_b = s_b[:, 2 * H:3 * H] * jnp.tanh(c_b)
        h = jnp.concatenate([h_f, h_b], axis=-1)            # fused carry (B, 2H)
        return h, c_f, c_b

    carry0 = (h_ref[...], c_ref[:, :H], c_ref[:, H:])
    if Ct <= 8:
        unroll = Ct                                         # fully unroll
    else:
        unroll = max(d for d in (8, 4, 2, 1) if Ct % d == 0)
    h, c_f, c_b = jax.lax.fori_loop(0, Ct, step, carry0, unroll=unroll)

    h_ref[...] = h
    c_ref[:, :H] = c_f
    c_ref[:, H:] = c_b

    @pl.when(chunk == pl.num_programs(0) - 1)
    def _():
        # h_n[0] + h_n[1]; Linear(H -> 1) is applied in the XLA wrapper.
        h_sum_ref[...] = h[:, :H] + h[:, H:]


def _reorder_gates(w, H):
    """PyTorch gate column order (i, f, g, o) -> kernel order (i, f, o, g)."""
    return jnp.concatenate(
        [w[..., 0:H], w[..., H:2 * H], w[..., 3 * H:4 * H], w[..., 2 * H:3 * H]],
        axis=-1)


def _pack_params(params, H):
    """Build fused input-projection / recurrent weights from per-direction params."""
    w_in = jnp.concatenate([_reorder_gates(params["w_ih_f"], H),
                            _reorder_gates(params["w_ih_b"], H)], axis=-1)  # (E, 8H)
    b = jnp.concatenate([_reorder_gates(params["b_f"], H),
                         _reorder_gates(params["b_b"], H)], axis=-1)        # (1, 8H)
    w_rec = jnp.zeros((2 * H, 8 * H), jnp.float32)
    w_rec = w_rec.at[:H, :4 * H].set(_reorder_gates(params["w_hh_f"], H))
    w_rec = w_rec.at[H:, 4 * H:].set(_reorder_gates(params["w_hh_b"], H))
    return w_in, b, w_rec


def lstm_forward(text, params):
    """text: (B, T, E) float32 -> (B, 1) float32."""
    B, T, E = text.shape
    H = params["w_hh_f"].shape[0]
    assert (4 * H) % 128 == 0, "4*hidden_dim must be a multiple of 128 lanes"

    w_in, b_in, w_rec = _pack_params(params, H)
    x = jnp.transpose(text, (1, 0, 2)).astype(jnp.float32)          # (T, B, E)

    # One fused input projection for both directions (time-parallel, plain XLA).
    pre = (x.reshape(T * B, E) @ w_in + b_in).reshape(T, B, 8 * H)

    # Time-chunk size: double-buffered fwd+bwd chunks must fit an 8 MiB budget
    # (safe under v5e/v6e/v7x scoped-VMEM defaults).
    budget = 8 * 1024 * 1024
    per_t_bytes = B * 8 * H * 4 * 2          # one time step, both dirs, 2 buffers
    ct = 1
    for d in range(T, 0, -1):
        if T % d == 0 and d * per_t_bytes <= budget:
            ct = d
            break
    nc = T // ct

    grid_spec = pltpu.PrefetchScalarGridSpec(
        num_scalar_prefetch=0,
        grid=(nc,),
        in_specs=[
            # Forward half of the pre-activation slab, chunk c.
            pl.BlockSpec((ct, B, 4 * H), lambda c: (c, 0, 0)),
            # Backward half, chunk nc-1-c (natural time; reversed in-kernel).
            pl.BlockSpec((ct, B, 4 * H), lambda c: (nc - 1 - c, 0, 1)),
            # Fused recurrent weights, resident across the whole grid.
            pl.BlockSpec((2 * H, 8 * H), lambda c: (0, 0)),
        ],
        out_specs=pl.BlockSpec((B, H), lambda c: (0, 0)),
        scratch_shapes=[pltpu.VMEM((B, 2 * H), jnp.float32),   # h carry
                        pltpu.VMEM((B, 2 * H), jnp.float32)],  # c carry
    )

    h_sum = pl.pallas_call(
        _bilstm_chunk_kernel,
        out_shape=jax.ShapeDtypeStruct((B, H), jnp.float32),
        grid_spec=grid_spec,
        compiler_params=pltpu.CompilerParams(
            dimension_semantics=("arbitrary",)),
    )(pre, pre, w_rec)

    # TODO(synk): nn.Dropout in training mode omitted — identity at inference.
    # Linear(H -> 1) in XLA (tiny; keeps the kernel's store lane-dense-ish).
    return h_sum @ params["w_lin"].T + params["b_lin"]


def lstm_reference(text, params):
    """Pure-JAX reference (lax.scan) for the same forward pass."""
    x = jnp.transpose(text, (1, 0, 2)).astype(jnp.float32)          # (T, B, E)
    B = text.shape[0]
    H = params["w_hh_f"].shape[0]

    def make_step(wi, wh, b):
        def step(carry, x_t):
            h, c = carry
            g = x_t @ wi + h @ wh + b                               # (B, 4H)
            i_g = jax.nn.sigmoid(g[:, 0:H])
            f_g = jax.nn.sigmoid(g[:, H:2 * H])
            g_g = jnp.tanh(g[:, 2 * H:3 * H])
            o_g = jax.nn.sigmoid(g[:, 3 * H:4 * H])
            c = f_g * c + i_g * g_g
            h = o_g * jnp.tanh(c)
            return (h, c), None
        return step

    init = (jnp.zeros((B, H), jnp.float32), jnp.zeros((B, H), jnp.float32))
    (h_f, _), _ = jax.lax.scan(
        make_step(params["w_ih_f"], params["w_hh_f"], params["b_f"]), init, x)
    (h_b, _), _ = jax.lax.scan(
        make_step(params["w_ih_b"], params["w_hh_b"], params["b_b"]), init,
        x[::-1])
    return (h_f + h_b) @ params["w_lin"].T + params["b_lin"]


def init_params(key, embedding_dim, hidden_dim):
    """Deterministic init mimicking PyTorch's U(-1/sqrt(H), 1/sqrt(H)).

    Per-direction layout (PyTorch gate order i, f, g, o along the last axis):
      w_ih: (E, 4H), w_hh: (H, 4H), b: (1, 4H) = b_ih + b_hh,
      w_lin: (1, H), b_lin: (1, 1).
    """
    k = 1.0 / np.sqrt(hidden_dim)
    keys = jax.random.split(key, 10)
    H4 = 4 * hidden_dim

    def u(kk, shape, bound=k):
        return jax.random.uniform(kk, shape, jnp.float32, -bound, bound)

    return {
        "w_ih_f": u(keys[0], (embedding_dim, H4)),
        "w_hh_f": u(keys[1], (hidden_dim, H4)),
        "b_f":    u(keys[2], (1, H4)) + u(keys[3], (1, H4)),   # b_ih + b_hh
        "w_ih_b": u(keys[4], (embedding_dim, H4)),
        "w_hh_b": u(keys[5], (hidden_dim, H4)),
        "b_b":    u(keys[6], (1, H4)) + u(keys[7], (1, H4)),
        "w_lin":  u(keys[8], (1, hidden_dim)),
        "b_lin":  u(keys[9], (1, 1)),
    }


if __name__ == "__main__":
    B, T, E, H = 2, 8, 16, 32   # batch, seq, embedding_dim, hidden_dim
    # (n_layers=2, dropout=0.5 in the module: layers >= 1 do not affect the
    #  output used by forward(), and dropout is identity at inference.)

    key = jax.random.PRNGKey(0)
    k_x, k_p = jax.random.split(key)
    text = jax.random.normal(k_x, (B, T, E), jnp.float32)
    params = init_params(k_p, E, H)

    out = lstm_forward(text, params)
    out = jax.block_until_ready(out)

    ref = lstm_reference(text, params)
    np.testing.assert_allclose(np.asarray(out), np.asarray(ref),
                               rtol=1e-5, atol=1e-5)
    assert out.shape == (B, 1)
    print("KERNEL_OK")
</pallas_src>

<mosaic_0001>
module attributes {stable_mosaic.version = 11 : i64} {
  func.func @_bilstm_chunk_kernel(%arg0: i32, %arg1: memref<8x2x128xf32, #tpu.memory_space<vmem>>, %arg2: memref<8x2x128xf32, #tpu.memory_space<vmem>>, %arg3: memref<64x256xf32, #tpu.memory_space<vmem>>, %arg4: memref<2x32xf32, #tpu.memory_space<vmem>>, %arg5: memref<2x64xf32, #tpu.memory_space<vmem>>, %arg6: memref<2x64xf32, #tpu.memory_space<vmem>>) attributes {dimension_semantics = [#tpu.dimension_semantics<arbitrary>], iteration_bounds = array<i64: 1>, scalar_prefetch = 0 : i64, scratch_operands = 2 : i64, tpu.core_type = #tpu.core_type<tc>, window_params = [{transform_indices = @transform_0, window_bounds = array<i64: 8, 2, 128>}, {transform_indices = @transform_1, window_bounds = array<i64: 8, 2, 128>}, {pipeline_mode = #tpu.pipeline_mode<synchronous>, transform_indices = @transform_2, window_bounds = array<i64: 64, 256>}, {pipeline_mode = #tpu.pipeline_mode<synchronous>, transform_indices = @transform_3, window_bounds = array<i64: 2, 32>}]} {
    %c0_i32 = arith.constant 0 : i32
    %0 = arith.cmpi eq, %arg0, %c0_i32 : i32
    %1 = arith.extui %0 : i1 to i32
    %c0_i32_0 = arith.constant 0 : i32
    %2 = arith.cmpi ne, %1, %c0_i32_0 : i32
    scf.if %2 {
      %cst_79 = arith.constant 0.000000e+00 : f32
      %373 = vector.broadcast %cst_79 : f32 to vector<2x64xf32>
      %c0_80 = arith.constant 0 : index
      %c0_81 = arith.constant 0 : index
      %374 = vector.load %arg5[%c0_80, %c0_81] : memref<2x64xf32, #tpu.memory_space<vmem>>, vector<2x64xf32>
      tpu.vector_store %arg5[%c0_80, %c0_81], %373 {strides = array<i32>} : memref<2x64xf32, #tpu.memory_space<vmem>>, vector<2x64xf32>,
      %cst_82 = arith.constant 0.000000e+00 : f32
      %375 = vector.broadcast %cst_82 : f32 to vector<2x64xf32>
      %c0_83 = arith.constant 0 : index
      %c0_84 = arith.constant 0 : index
      %376 = vector.load %arg6[%c0_83, %c0_84] : memref<2x64xf32, #tpu.memory_space<vmem>>, vector<2x64xf32>
      tpu.vector_store %arg6[%c0_83, %c0_84], %375 {strides = array<i32>} : memref<2x64xf32, #tpu.memory_space<vmem>>, vector<2x64xf32>,
    } else {
    }
    %c0 = arith.constant 0 : index
    %c0_1 = arith.constant 0 : index
    %3 = vector.load %arg3[%c0, %c0_1] : memref<64x256xf32, #tpu.memory_space<vmem>>, vector<64x256xf32>
    %c0_2 = arith.constant 0 : index
    %c0_3 = arith.constant 0 : index
    %4 = vector.load %arg5[%c0_2, %c0_3] : memref<2x64xf32, #tpu.memory_space<vmem>>, vector<2x64xf32>
    %c0_4 = arith.constant 0 : index
    %c0_5 = arith.constant 0 : index
    %5 = vector.load %arg6[%c0_4, %c0_5] : memref<2x64xf32, #tpu.memory_space<vmem>>, vector<2x32xf32>
    %c0_6 = arith.constant 0 : index
    %c32 = arith.constant 32 : index
    %6 = vector.load %arg6[%c0_6, %c32] : memref<2x64xf32, #tpu.memory_space<vmem>>, vector<2x32xf32>
    %c0_i32_7 = arith.constant 0 : i32
    %cst = arith.constant dense<0.000000e+00> : vector<2x256xf32>
    %7 = tpu.matmul %4, %3, %cst {dimension_numbers = #tpu.dot_dimension_numbers<[1], [0], [0], [1], [0, 0, 1, 1], [], []>} : vector<2x64xf32>, vector<64x256xf32>, vector<2x256xf32> -> vector<2x256xf32>
    %8 = vector.extract_strided_slice %7 {offsets = [0, 0], sizes = [2, 128], strides = [1, 1]} : vector<2x256xf32> to vector<2x128xf32>
    %9 = arith.index_cast %c0_i32_7 : i32 to index
    %c0_8 = arith.constant 0 : index
    %c0_9 = arith.constant 0 : index
    %10 = vector.load %arg1[%9, %c0_8, %c0_9] : memref<8x2x128xf32, #tpu.memory_space<vmem>>, vector<1x2x128xf32>
    %11 = vector.shape_cast %10 : vector<1x2x128xf32> to vector<2x128xf32>
    %12 = arith.addf %8, %11 : vector<2x128xf32>
    %13 = vector.extract_strided_slice %7 {offsets = [0, 128], sizes = [2, 128], strides = [1, 1]} : vector<2x256xf32> to vector<2x128xf32>
    %c7_i32 = arith.constant 7 : i32
    %14 = arith.subi %c7_i32, %c0_i32_7 : i32
    %15 = arith.index_cast %14 : i32 to index
    %c0_10 = arith.constant 0 : index
    %c0_11 = arith.constant 0 : index
    %16 = vector.load %arg2[%15, %c0_10, %c0_11] : memref<8x2x128xf32, #tpu.memory_space<vmem>>, vector<1x2x128xf32>
    %17 = vector.shape_cast %16 : vector<1x2x128xf32> to vector<2x128xf32>
    %18 = arith.addf %13, %17 : vector<2x128xf32>
    %19 = vector.extract_strided_slice %12 {offsets = [0, 0], sizes = [2, 96], strides = [1, 1]} : vector<2x128xf32> to vector<2x96xf32>
    %20 = arith.negf %19 : vector<2x96xf32>
    %21 = math.exp %20 : vector<2x96xf32>
    %cst_12 = arith.constant 1.000000e+00 : f32
    %22 = vector.broadcast %cst_12 : f32 to vector<2x96xf32>
    %23 = arith.addf %22, %21 : vector<2x96xf32>
    %24 = arith.divf %22, %23 : vector<2x96xf32>
    %25 = vector.extract_strided_slice %18 {offsets = [0, 0], sizes = [2, 96], strides = [1, 1]} : vector<2x128xf32> to vector<2x96xf32>
    %26 = arith.negf %25 : vector<2x96xf32>
    %27 = math.exp %26 : vector<2x96xf32>
    %cst_13 = arith.constant 1.000000e+00 : f32
    %28 = vector.broadcast %cst_13 : f32 to vector<2x96xf32>
    %29 = arith.addf %28, %27 : vector<2x96xf32>
    %30 = arith.divf %28, %29 : vector<2x96xf32>
    %31 = vector.extract_strided_slice %12 {offsets = [0, 96], sizes = [2, 32], strides = [1, 1]} : vector<2x128xf32> to vector<2x32xf32>
    %32 = math.tanh %31 : vector<2x32xf32>
    %33 = vector.extract_strided_slice %18 {offsets = [0, 96], sizes = [2, 32], strides = [1, 1]} : vector<2x128xf32> to vector<2x32xf32>
    %34 = math.tanh %33 : vector<2x32xf32>
    %35 = vector.extract_strided_slice %24 {offsets = [0, 32], sizes = [2, 32], strides = [1, 1]} : vector<2x96xf32> to vector<2x32xf32>
    %36 = arith.mulf %35, %5 : vector<2x32xf32>
    %37 = vector.extract_strided_slice %24 {offsets = [0, 0], sizes = [2, 32], strides = [1, 1]} : vector<2x96xf32> to vector<2x32xf32>
    %38 = arith.mulf %37, %32 : vector<2x32xf32>
    %39 = arith.addf %36, %38 : vector<2x32xf32>
    %40 = vector.extract_strided_slice %30 {offsets = [0, 32], sizes = [2, 32], strides = [1, 1]} : vector<2x96xf32> to vector<2x32xf32>
    %41 = arith.mulf %40, %6 : vector<2x32xf32>
    %42 = vector.extract_strided_slice %30 {offsets = [0, 0], sizes = [2, 32], strides = [1, 1]} : vector<2x96xf32> to vector<2x32xf32>
    %43 = arith.mulf %42, %34 : vector<2x32xf32>
    %44 = arith.addf %41, %43 : vector<2x32xf32>
    %45 = vector.extract_strided_slice %24 {offsets = [0, 64], sizes = [2, 32], strides = [1, 1]} : vector<2x96xf32> to vector<2x32xf32>
    %46 = math.tanh %39 : vector<2x32xf32>
    %47 = arith.mulf %45, %46 : vector<2x32xf32>
    %48 = vector.extract_strided_slice %30 {offsets = [0, 64], sizes = [2, 32], strides = [1, 1]} : vector<2x96xf32> to vector<2x32xf32>
    %49 = math.tanh %44 : vector<2x32xf32>
    %50 = arith.mulf %48, %49 : vector<2x32xf32>
    %51 = tpu.concatenate %47, %50 in 1 : vector<2x32xf32>, vector<2x32xf32> -> vector<2x64xf32>
    %c1_i32 = arith.constant 1 : i32
    %cst_14 = arith.constant dense<0.000000e+00> : vector<2x256xf32>
    %52 = tpu.matmul %51, %3, %cst_14 {dimension_numbers = #tpu.dot_dimension_numbers<[1], [0], [0], [1], [0, 0, 1, 1], [], []>} : vector<2x64xf32>, vector<64x256xf32>, vector<2x256xf32> -> vector<2x256xf32>
    %53 = vector.extract_strided_slice %52 {offsets = [0, 0], sizes = [2, 128], strides = [1, 1]} : vector<2x256xf32> to vector<2x128xf32>
    %54 = arith.index_cast %c1_i32 : i32 to index
    %c0_15 = arith.constant 0 : index
    %c0_16 = arith.constant 0 : index
    %55 = vector.load %arg1[%54, %c0_15, %c0_16] : memref<8x2x128xf32, #tpu.memory_space<vmem>>, vector<1x2x128xf32>
    %56 = vector.shape_cast %55 : vector<1x2x128xf32> to vector<2x128xf32>
    %57 = arith.addf %53, %56 : vector<2x128xf32>
    %58 = vector.extract_strided_slice %52 {offsets = [0, 128], sizes = [2, 128], strides = [1, 1]} : vector<2x256xf32> to vector<2x128xf32>
    %c7_i32_17 = arith.constant 7 : i32
    %59 = arith.subi %c7_i32_17, %c1_i32 : i32
    %60 = arith.index_cast %59 : i32 to index
    %c0_18 = arith.constant 0 : index
    %c0_19 = arith.constant 0 : index
    %61 = vector.load %arg2[%60, %c0_18, %c0_19] : memref<8x2x128xf32, #tpu.memory_space<vmem>>, vector<1x2x128xf32>
    %62 = vector.shape_cast %61 : vector<1x2x128xf32> to vector<2x128xf32>
    %63 = arith.addf %58, %62 : vector<2x128xf32>
    %64 = vector.extract_strided_slice %57 {offsets = [0, 0], sizes = [2, 96], strides = [1, 1]} : vector<2x128xf32> to vector<2x96xf32>
    %65 = arith.negf %64 : vector<2x96xf32>
    %66 = math.exp %65 : vector<2x96xf32>
    %cst_20 = arith.constant 1.000000e+00 : f32
    %67 = vector.broadcast %cst_20 : f32 to vector<2x96xf32>
    %68 = arith.addf %67, %66 : vector<2x96xf32>
    %69 = arith.divf %67, %68 : vector<2x96xf32>
    %70 = vector.extract_strided_slice %63 {offsets = [0, 0], sizes = [2, 96], strides = [1, 1]} : vector<2x128xf32> to vector<2x96xf32>
    %71 = arith.negf %70 : vector<2x96xf32>
    %72 = math.exp %71 : vector<2x96xf32>
    %cst_21 = arith.constant 1.000000e+00 : f32
    %73 = vector.broadcast %cst_21 : f32 to vector<2x96xf32>
    %74 = arith.addf %73, %72 : vector<2x96xf32>
    %75 = arith.divf %73, %74 : vector<2x96xf32>
    %76 = vector.extract_strided_slice %57 {offsets = [0, 96], sizes = [2, 32], strides = [1, 1]} : vector<2x128xf32> to vector<2x32xf32>
    %77 = math.tanh %76 : vector<2x32xf32>
    %78 = vector.extract_strided_slice %63 {offsets = [0, 96], sizes = [2, 32], strides = [1, 1]} : vector<2x128xf32> to vector<2x32xf32>
    %79 = math.tanh %78 : vector<2x32xf32>
    %80 = vector.extract_strided_slice %69 {offsets = [0, 32], sizes = [2, 32], strides = [1, 1]} : vector<2x96xf32> to vector<2x32xf32>
    %81 = arith.mulf %80, %39 : vector<2x32xf32>
    %82 = vector.extract_strided_slice %69 {offsets = [0, 0], sizes = [2, 32], strides = [1, 1]} : vector<2x96xf32> to vector<2x32xf32>
    %83 = arith.mulf %82, %77 : vector<2x32xf32>
    %84 = arith.addf %81, %83 : vector<2x32xf32>
    %85 = vector.extract_strided_slice %75 {offsets = [0, 32], sizes = [2, 32], strides = [1, 1]} : vector<2x96xf32> to vector<2x32xf32>
    %86 = arith.mulf %85, %44 : vector<2x32xf32>
    %87 = vector.extract_strided_slice %75 {offsets = [0, 0], sizes = [2, 32], strides = [1, 1]} : vector<2x96xf32> to vector<2x32xf32>
    %88 = arith.mulf %87, %79 : vector<2x32xf32>
    %89 = arith.addf %86, %88 : vector<2x32xf32>
    %90 = vector.extract_strided_slice %69 {offsets = [0, 64], sizes = [2, 32], strides = [1, 1]} : vector<2x96xf32> to vector<2x32xf32>
    %91 = math.tanh %84 : vector<2x32xf32>
    %92 = arith.mulf %90, %91 : vector<2x32xf32>
    %93 = vector.extract_strided_slice %75 {offsets = [0, 64], sizes = [2, 32], strides = [1, 1]} : vector<2x96xf32> to vector<2x32xf32>
    %94 = math.tanh %89 : vector<2x32xf32>
    %95 = arith.mulf %93, %94 : vector<2x32xf32>
    %96 = tpu.concatenate %92, %95 in 1 : vector<2x32xf32>, vector<2x32xf32> -> vector<2x64xf32>
    %c2_i32 = arith.constant 2 : i32
    %cst_22 = arith.constant dense<0.000000e+00> : vector<2x256xf32>
    %97 = tpu.matmul %96, %3, %cst_22 {dimension_numbers = #tpu.dot_dimension_numbers<[1], [0], [0], [1], [0, 0, 1, 1], [], []>} : vector<2x64xf32>, vector<64x256xf32>, vector<2x256xf32> -> vector<2x256xf32>
    %98 = vector.extract_strided_slice %97 {offsets = [0, 0], sizes = [2, 128], strides = [1, 1]} : vector<2x256xf32> to vector<2x128xf32>
    %99 = arith.index_cast %c2_i32 : i32 to index
    %c0_23 = arith.constant 0 : index
    %c0_24 = arith.constant 0 : index
    %100 = vector.load %arg1[%99, %c0_23, %c0_24] : memref<8x2x128xf32, #tpu.memory_space<vmem>>, vector<1x2x128xf32>
    %101 = vector.shape_cast %100 : vector<1x2x128xf32> to vector<2x128xf32>
    %102 = arith.addf %98, %101 : vector<2x128xf32>
    %103 = vector.extract_strided_slice %97 {offsets = [0, 128], sizes = [2, 128], strides = [1, 1]} : vector<2x256xf32> to vector<2x128xf32>
    %c7_i32_25 = arith.constant 7 : i32
    %104 = arith.subi %c7_i32_25, %c2_i32 : i32
    %105 = arith.index_cast %104 : i32 to index
    %c0_26 = arith.constant 0 : index
    %c0_27 = arith.constant 0 : index
    %106 = vector.load %arg2[%105, %c0_26, %c0_27] : memref<8x2x128xf32, #tpu.memory_space<vmem>>, vector<1x2x128xf32>
    %107 = vector.shape_cast %106 : vector<1x2x128xf32> to vector<2x128xf32>
    %108 = arith.addf %103, %107 : vector<2x128xf32>
    %109 = vector.extract_strided_slice %102 {offsets = [0, 0], sizes = [2, 96], strides = [1, 1]} : vector<2x128xf32> to vector<2x96xf32>
    %110 = arith.negf %109 : vector<2x96xf32>
    %111 = math.exp %110 : vector<2x96xf32>
    %cst_28 = arith.constant 1.000000e+00 : f32
    %112 = vector.broadcast %cst_28 : f32 to vector<2x96xf32>
    %113 = arith.addf %112, %111 : vector<2x96xf32>
    %114 = arith.divf %112, %113 : vector<2x96xf32>
    %115 = vector.extract_strided_slice %108 {offsets = [0, 0], sizes = [2, 96], strides = [1, 1]} : vector<2x128xf32> to vector<2x96xf32>
    %116 = arith.negf %115 : vector<2x96xf32>
    %117 = math.exp %116 : vector<2x96xf32>
    %cst_29 = arith.constant 1.000000e+00 : f32
    %118 = vector.broadcast %cst_29 : f32 to vector<2x96xf32>
    %119 = arith.addf %118, %117 : vector<2x96xf32>
    %120 = arith.divf %118, %119 : vector<2x96xf32>
    %121 = vector.extract_strided_slice %102 {offsets = [0, 96], sizes = [2, 32], strides = [1, 1]} : vector<2x128xf32> to vector<2x32xf32>
    %122 = math.tanh %121 : vector<2x32xf32>
    %123 = vector.extract_strided_slice %108 {offsets = [0, 96], sizes = [2, 32], strides = [1, 1]} : vector<2x128xf32> to vector<2x32xf32>
    %124 = math.tanh %123 : vector<2x32xf32>
    %125 = vector.extract_strided_slice %114 {offsets = [0, 32], sizes = [2, 32], strides = [1, 1]} : vector<2x96xf32> to vector<2x32xf32>
    %126 = arith.mulf %125, %84 : vector<2x32xf32>
    %127 = vector.extract_strided_slice %114 {offsets = [0, 0], sizes = [2, 32], strides = [1, 1]} : vector<2x96xf32> to vector<2x32xf32>
    %128 = arith.mulf %127, %122 : vector<2x32xf32>
    %129 = arith.addf %126, %128 : vector<2x32xf32>
    %130 = vector.extract_strided_slice %120 {offsets = [0, 32], sizes = [2, 32], strides = [1, 1]} : vector<2x96xf32> to vector<2x32xf32>
    %131 = arith.mulf %130, %89 : vector<2x32xf32>
    %132 = vector.extract_strided_slice %120 {offsets = [0, 0], sizes = [2, 32], strides = [1, 1]} : vector<2x96xf32> to vector<2x32xf32>
    %133 = arith.mulf %132, %124 : vector<2x32xf32>
    %134 = arith.addf %131, %133 : vector<2x32xf32>
    %135 = vector.extract_strided_slice %114 {offsets = [0, 64], sizes = [2, 32], strides = [1, 1]} : vector<2x96xf32> to vector<2x32xf32>
    %136 = math.tanh %129 : vector<2x32xf32>
    %137 = arith.mulf %135, %136 : vector<2x32xf32>
    %138 = vector.extract_strided_slice %120 {offsets = [0, 64], sizes = [2, 32], strides = [1, 1]} : vector<2x96xf32> to vector<2x32xf32>
    %139 = math.tanh %134 : vector<2x32xf32>
    %140 = arith.mulf %138, %139 : vector<2x32xf32>
    %141 = tpu.concatenate %137, %140 in 1 : vector<2x32xf32>, vector<2x32xf32> -> vector<2x64xf32>
    %c3_i32 = arith.constant 3 : i32
    %cst_30 = arith.constant dense<0.000000e+00> : vector<2x256xf32>
    %142 = tpu.matmul %141, %3, %cst_30 {dimension_numbers = #tpu.dot_dimension_numbers<[1], [0], [0], [1], [0, 0, 1, 1], [], []>} : vector<2x64xf32>, vector<64x256xf32>, vector<2x256xf32> -> vector<2x256xf32>
    %143 = vector.extract_strided_slice %142 {offsets = [0, 0], sizes = [2, 128], strides = [1, 1]} : vector<2x256xf32> to vector<2x128xf32>
    %144 = arith.index_cast %c3_i32 : i32 to index
    %c0_31 = arith.constant 0 : index
    %c0_32 = arith.constant 0 : index
    %145 = vector.load %arg1[%144, %c0_31, %c0_32] : memref<8x2x128xf32, #tpu.memory_space<vmem>>, vector<1x2x128xf32>
    %146 = vector.shape_cast %145 : vector<1x2x128xf32> to vector<2x128xf32>
    %147 = arith.addf %143, %146 : vector<2x128xf32>
    %148 = vector.extract_strided_slice %142 {offsets = [0, 128], sizes = [2, 128], strides = [1, 1]} : vector<2x256xf32> to vector<2x128xf32>
    %c7_i32_33 = arith.constant 7 : i32
    %149 = arith.subi %c7_i32_33, %c3_i32 : i32
    %150 = arith.index_cast %149 : i32 to index
    %c0_34 = arith.constant 0 : index
    %c0_35 = arith.constant 0 : index
    %151 = vector.load %arg2[%150, %c0_34, %c0_35] : memref<8x2x128xf32, #tpu.memory_space<vmem>>, vector<1x2x128xf32>
    %152 = vector.shape_cast %151 : vector<1x2x128xf32> to vector<2x128xf32>
    %153 = arith.addf %148, %152 : vector<2x128xf32>
    %154 = vector.extract_strided_slice %147 {offsets = [0, 0], sizes = [2, 96], strides = [1, 1]} : vector<2x128xf32> to vector<2x96xf32>
    %155 = arith.negf %154 : vector<2x96xf32>
    %156 = math.exp %155 : vector<2x96xf32>
    %cst_36 = arith.constant 1.000000e+00 : f32
    %157 = vector.broadcast %cst_36 : f32 to vector<2x96xf32>
    %158 = arith.addf %157, %156 : vector<2x96xf32>
    %159 = arith.divf %157, %158 : vector<2x96xf32>
    %160 = vector.extract_strided_slice %153 {offsets = [0, 0], sizes = [2, 96], strides = [1, 1]} : vector<2x128xf32> to vector<2x96xf32>
    %161 = arith.negf %160 : vector<2x96xf32>
    %162 = math.exp %161 : vector<2x96xf32>
    %cst_37 = arith.constant 1.000000e+00 : f32
    %163 = vector.broadcast %cst_37 : f32 to vector<2x96xf32>
    %164 = arith.addf %163, %162 : vector<2x96xf32>
    %165 = arith.divf %163, %164 : vector<2x96xf32>
    %166 = vector.extract_strided_slice %147 {offsets = [0, 96], sizes = [2, 32], strides = [1, 1]} : vector<2x128xf32> to vector<2x32xf32>
    %167 = math.tanh %166 : vector<2x32xf32>
    %168 = vector.extract_strided_slice %153 {offsets = [0, 96], sizes = [2, 32], strides = [1, 1]} : vector<2x128xf32> to vector<2x32xf32>
    %169 = math.tanh %168 : vector<2x32xf32>
    %170 = vector.extract_strided_slice %159 {offsets = [0, 32], sizes = [2, 32], strides = [1, 1]} : vector<2x96xf32> to vector<2x32xf32>
    %171 = arith.mulf %170, %129 : vector<2x32xf32>
    %172 = vector.extract_strided_slice %159 {offsets = [0, 0], sizes = [2, 32], strides = [1, 1]} : vector<2x96xf32> to vector<2x32xf32>
    %173 = arith.mulf %172, %167 : vector<2x32xf32>
    %174 = arith.addf %171, %173 : vector<2x32xf32>
    %175 = vector.extract_strided_slice %165 {offsets = [0, 32], sizes = [2, 32], strides = [1, 1]} : vector<2x96xf32> to vector<2x32xf32>
    %176 = arith.mulf %175, %134 : vector<2x32xf32>
    %177 = vector.extract_strided_slice %165 {offsets = [0, 0], sizes = [2, 32], strides = [1, 1]} : vector<2x96xf32> to vector<2x32xf32>
    %178 = arith.mulf %177, %169 : vector<2x32xf32>
    %179 = arith.addf %176, %178 : vector<2x32xf32>
    %180 = vector.extract_strided_slice %159 {offsets = [0, 64], sizes = [2, 32], strides = [1, 1]} : vector<2x96xf32> to vector<2x32xf32>
    %181 = math.tanh %174 : vector<2x32xf32>
    %182 = arith.mulf %180, %181 : vector<2x32xf32>
    %183 = vector.extract_strided_slice %165 {offsets = [0, 64], sizes = [2, 32], strides = [1, 1]} : vector<2x96xf32> to vector<2x32xf32>
    %184 = math.tanh %179 : vector<2x32xf32>
    %185 = arith.mulf %183, %184 : vector<2x32xf32>
    %186 = tpu.concatenate %182, %185 in 1 : vector<2x32xf32>, vector<2x32xf32> -> vector<2x64xf32>
    %c4_i32 = arith.constant 4 : i32
    %cst_38 = arith.constant dense<0.000000e+00> : vector<2x256xf32>
    %187 = tpu.matmul %186, %3, %cst_38 {dimension_numbers = #tpu.dot_dimension_numbers<[1], [0], [0], [1], [0, 0, 1, 1], [], []>} : vector<2x64xf32>, vector<64x256xf32>, vector<2x256xf32> -> vector<2x256xf32>
    %188 = vector.extract_strided_slice %187 {offsets = [0, 0], sizes = [2, 128], strides = [1, 1]} : vector<2x256xf32> to vector<2x128xf32>
    %189 = arith.index_cast %c4_i32 : i32 to index
    %c0_39 = arith.constant 0 : index
    %c0_40 = arith.constant 0 : index
    %190 = vector.load %arg1[%189, %c0_39, %c0_40] : memref<8x2x128xf32, #tpu.memory_space<vmem>>, vector<1x2x128xf32>
    %191 = vector.shape_cast %190 : vector<1x2x128xf32> to vector<2x128xf32>
    %192 = arith.addf %188, %191 : vector<2x128xf32>
    %193 = vector.extract_strided_slice %187 {offsets = [0, 128], sizes = [2, 128], strides = [1, 1]} : vector<2x256xf32> to vector<2x128xf32>
    %c7_i32_41 = arith.constant 7 : i32
    %194 = arith.subi %c7_i32_41, %c4_i32 : i32
    %195 = arith.index_cast %194 : i32 to index
    %c0_42 = arith.constant 0 : index
    %c0_43 = arith.constant 0 : index
    %196 = vector.load %arg2[%195, %c0_42, %c0_43] : memref<8x2x128xf32, #tpu.memory_space<vmem>>, vector<1x2x128xf32>
    %197 = vector.shape_cast %196 : vector<1x2x128xf32> to vector<2x128xf32>
    %198 = arith.addf %193, %197 : vector<2x128xf32>
    %199 = vector.extract_strided_slice %192 {offsets = [0, 0], sizes = [2, 96], strides = [1, 1]} : vector<2x128xf32> to vector<2x96xf32>
    %200 = arith.negf %199 : vector<2x96xf32>
    %201 = math.exp %200 : vector<2x96xf32>
    %cst_44 = arith.constant 1.000000e+00 : f32
    %202 = vector.broadcast %cst_44 : f32 to vector<2x96xf32>
    %203 = arith.addf %202, %201 : vector<2x96xf32>
    %204 = arith.divf %202, %203 : vector<2x96xf32>
    %205 = vector.extract_strided_slice %198 {offsets = [0, 0], sizes = [2, 96], strides = [1, 1]} : vector<2x128xf32> to vector<2x96xf32>
    %206 = arith.negf %205 : vector<2x96xf32>
    %207 = math.exp %206 : vector<2x96xf32>
    %cst_45 = arith.constant 1.000000e+00 : f32
    %208 = vector.broadcast %cst_45 : f32 to vector<2x96xf32>
    %209 = arith.addf %208, %207 : vector<2x96xf32>
    %210 = arith.divf %208, %209 : vector<2x96xf32>
    %211 = vector.extract_strided_slice %192 {offsets = [0, 96], sizes = [2, 32], strides = [1, 1]} : vector<2x128xf32> to vector<2x32xf32>
    %212 = math.tanh %211 : vector<2x32xf32>
    %213 = vector.extract_strided_slice %198 {offsets = [0, 96], sizes = [2, 32], strides = [1, 1]} : vector<2x128xf32> to vector<2x32xf32>
    %214 = math.tanh %213 : vector<2x32xf32>
    %215 = vector.extract_strided_slice %204 {offsets = [0, 32], sizes = [2, 32], strides = [1, 1]} : vector<2x96xf32> to vector<2x32xf32>
    %216 = arith.mulf %215, %174 : vector<2x32xf32>
    %217 = vector.extract_strided_slice %204 {offsets = [0, 0], sizes = [2, 32], strides = [1, 1]} : vector<2x96xf32> to vector<2x32xf32>
    %218 = arith.mulf %217, %212 : vector<2x32xf32>
    %219 = arith.addf %216, %218 : vector<2x32xf32>
    %220 = vector.extract_strided_slice %210 {offsets = [0, 32], sizes = [2, 32], strides = [1, 1]} : vector<2x96xf32> to vector<2x32xf32>
    %221 = arith.mulf %220, %179 : vector<2x32xf32>
    %222 = vector.extract_strided_slice %210 {offsets = [0, 0], sizes = [2, 32], strides = [1, 1]} : vector<2x96xf32> to vector<2x32xf32>
    %223 = arith.mulf %222, %214 : vector<2x32xf32>
    %224 = arith.addf %221, %223 : vector<2x32xf32>
    %225 = vector.extract_strided_slice %204 {offsets = [0, 64], sizes = [2, 32], strides = [1, 1]} : vector<2x96xf32> to vector<2x32xf32>
    %226 = math.tanh %219 : vector<2x32xf32>
    %227 = arith.mulf %225, %226 : vector<2x32xf32>
    %228 = vector.extract_strided_slice %210 {offsets = [0, 64], sizes = [2, 32], strides = [1, 1]} : vector<2x96xf32> to vector<2x32xf32>
    %229 = math.tanh %224 : vector<2x32xf32>
    %230 = arith.mulf %228, %229 : vector<2x32xf32>
    %231 = tpu.concatenate %227, %230 in 1 : vector<2x32xf32>, vector<2x32xf32> -> vector<2x64xf32>
    %c5_i32 = arith.constant 5 : i32
    %cst_46 = arith.constant dense<0.000000e+00> : vector<2x256xf32>
    %232 = tpu.matmul %231, %3, %cst_46 {dimension_numbers = #tpu.dot_dimension_numbers<[1], [0], [0], [1], [0, 0, 1, 1], [], []>} : vector<2x64xf32>, vector<64x256xf32>, vector<2x256xf32> -> vector<2x256xf32>
    %233 = vector.extract_strided_slice %232 {offsets = [0, 0], sizes = [2, 128], strides = [1, 1]} : vector<2x256xf32> to vector<2x128xf32>
    %234 = arith.index_cast %c5_i32 : i32 to index
    %c0_47 = arith.constant 0 : index
    %c0_48 = arith.constant 0 : index
    %235 = vector.load %arg1[%234, %c0_47, %c0_48] : memref<8x2x128xf32, #tpu.memory_space<vmem>>, vector<1x2x128xf32>
    %236 = vector.shape_cast %235 : vector<1x2x128xf32> to vector<2x128xf32>
    %237 = arith.addf %233, %236 : vector<2x128xf32>
    %238 = vector.extract_strided_slice %232 {offsets = [0, 128], sizes = [2, 128], strides = [1, 1]} : vector<2x256xf32> to vector<2x128xf32>
    %c7_i32_49 = arith.constant 7 : i32
    %239 = arith.subi %c7_i32_49, %c5_i32 : i32
    %240 = arith.index_cast %239 : i32 to index
    %c0_50 = arith.constant 0 : index
    %c0_51 = arith.constant 0 : index
    %241 = vector.load %arg2[%240, %c0_50, %c0_51] : memref<8x2x128xf32, #tpu.memory_space<vmem>>, vector<1x2x128xf32>
    %242 = vector.shape_cast %241 : vector<1x2x128xf32> to vector<2x128xf32>
    %243 = arith.addf %238, %242 : vector<2x128xf32>
    %244 = vector.extract_strided_slice %237 {offsets = [0, 0], sizes = [2, 96], strides = [1, 1]} : vector<2x128xf32> to vector<2x96xf32>
    %245 = arith.negf %244 : vector<2x96xf32>
    %246 = math.exp %245 : vector<2x96xf32>
    %cst_52 = arith.constant 1.000000e+00 : f32
    %247 = vector.broadcast %cst_52 : f32 to vector<2x96xf32>
    %248 = arith.addf %247, %246 : vector<2x96xf32>
    %249 = arith.divf %247, %248 : vector<2x96xf32>
    %250 = vector.extract_strided_slice %243 {offsets = [0, 0], sizes = [2, 96], strides = [1, 1]} : vector<2x128xf32> to vector<2x96xf32>
    %251 = arith.negf %250 : vector<2x96xf32>
    %252 = math.exp %251 : vector<2x96xf32>
    %cst_53 = arith.constant 1.000000e+00 : f32
    %253 = vector.broadcast %cst_53 : f32 to vector<2x96xf32>
    %254 = arith.addf %253, %252 : vector<2x96xf32>
    %255 = arith.divf %253, %254 : vector<2x96xf32>
    %256 = vector.extract_strided_slice %237 {offsets = [0, 96], sizes = [2, 32], strides = [1, 1]} : vector<2x128xf32> to vector<2x32xf32>
    %257 = math.tanh %256 : vector<2x32xf32>
    %258 = vector.extract_strided_slice %243 {offsets = [0, 96], sizes = [2, 32], strides = [1, 1]} : vector<2x128xf32> to vector<2x32xf32>
    %259 = math.tanh %258 : vector<2x32xf32>
    %260 = vector.extract_strided_slice %249 {offsets = [0, 32], sizes = [2, 32], strides = [1, 1]} : vector<2x96xf32> to vector<2x32xf32>
    %261 = arith.mulf %260, %219 : vector<2x32xf32>
    %262 = vector.extract_strided_slice %249 {offsets = [0, 0], sizes = [2, 32], strides = [1, 1]} : vector<2x96xf32> to vector<2x32xf32>
    %263 = arith.mulf %262, %257 : vector<2x32xf32>
    %264 = arith.addf %261, %263 : vector<2x32xf32>
    %265 = vector.extract_strided_slice %255 {offsets = [0, 32], sizes = [2, 32], strides = [1, 1]} : vector<2x96xf32> to vector<2x32xf32>
    %266 = arith.mulf %265, %224 : vector<2x32xf32>
    %267 = vector.extract_strided_slice %255 {offsets = [0, 0], sizes = [2, 32], strides = [1, 1]} : vector<2x96xf32> to vector<2x32xf32>
    %268 = arith.mulf %267, %259 : vector<2x32xf32>
    %269 = arith.addf %266, %268 : vector<2x32xf32>
    %270 = vector.extract_strided_slice %249 {offsets = [0, 64], sizes = [2, 32], strides = [1, 1]} : vector<2x96xf32> to vector<2x32xf32>
    %271 = math.tanh %264 : vector<2x32xf32>
    %272 = arith.mulf %270, %271 : vector<2x32xf32>
    %273 = vector.extract_strided_slice %255 {offsets = [0, 64], sizes = [2, 32], strides = [1, 1]} : vector<2x96xf32> to vector<2x32xf32>
    %274 = math.tanh %269 : vector<2x32xf32>
    %275 = arith.mulf %273, %274 : vector<2x32xf32>
    %276 = tpu.concatenate %272, %275 in 1 : vector<2x32xf32>, vector<2x32xf32> -> vector<2x64xf32>
    %c6_i32 = arith.constant 6 : i32
    %cst_54 = arith.constant dense<0.000000e+00> : vector<2x256xf32>
    %277 = tpu.matmul %276, %3, %cst_54 {dimension_numbers = #tpu.dot_dimension_numbers<[1], [0], [0], [1], [0, 0, 1, 1], [], []>} : vector<2x64xf32>, vector<64x256xf32>, vector<2x256xf32> -> vector<2x256xf32>
    %278 = vector.extract_strided_slice %277 {offsets = [0, 0], sizes = [2, 128], strides = [1, 1]} : vector<2x256xf32> to vector<2x128xf32>
    %279 = arith.index_cast %c6_i32 : i32 to index
    %c0_55 = arith.constant 0 : index
    %c0_56 = arith.constant 0 : index
    %280 = vector.load %arg1[%279, %c0_55, %c0_56] : memref<8x2x128xf32, #tpu.memory_space<vmem>>, vector<1x2x128xf32>
    %281 = vector.shape_cast %280 : vector<1x2x128xf32> to vector<2x128xf32>
    %282 = arith.addf %278, %281 : vector<2x128xf32>
    %283 = vector.extract_strided_slice %277 {offsets = [0, 128], sizes = [2, 128], strides = [1, 1]} : vector<2x256xf32> to vector<2x128xf32>
    %c7_i32_57 = arith.constant 7 : i32
    %284 = arith.subi %c7_i32_57, %c6_i32 : i32
    %285 = arith.index_cast %284 : i32 to index
    %c0_58 = arith.constant 0 : index
    %c0_59 = arith.constant 0 : index
    %286 = vector.load %arg2[%285, %c0_58, %c0_59] : memref<8x2x128xf32, #tpu.memory_space<vmem>>, vector<1x2x128xf32>
    %287 = vector.shape_cast %286 : vector<1x2x128xf32> to vector<2x128xf32>
    %288 = arith.addf %283, %287 : vector<2x128xf32>
    %289 = vector.extract_strided_slice %282 {offsets = [0, 0], sizes = [2, 96], strides = [1, 1]} : vector<2x128xf32> to vector<2x96xf32>
    %290 = arith.negf %289 : vector<2x96xf32>
    %291 = math.exp %290 : vector<2x96xf32>
    %cst_60 = arith.constant 1.000000e+00 : f32
    %292 = vector.broadcast %cst_60 : f32 to vector<2x96xf32>
    %293 = arith.addf %292, %291 : vector<2x96xf32>
    %294 = arith.divf %292, %293 : vector<2x96xf32>
    %295 = vector.extract_strided_slice %288 {offsets = [0, 0], sizes = [2, 96], strides = [1, 1]} : vector<2x128xf32> to vector<2x96xf32>
    %296 = arith.negf %295 : vector<2x96xf32>
    %297 = math.exp %296 : vector<2x96xf32>
    %cst_61 = arith.constant 1.000000e+00 : f32
    %298 = vector.broadcast %cst_61 : f32 to vector<2x96xf32>
    %299 = arith.addf %298, %297 : vector<2x96xf32>
    %300 = arith.divf %298, %299 : vector<2x96xf32>
    %301 = vector.extract_strided_slice %282 {offsets = [0, 96], sizes = [2, 32], strides = [1, 1]} : vector<2x128xf32> to vector<2x32xf32>
    %302 = math.tanh %301 : vector<2x32xf32>
    %303 = vector.extract_strided_slice %288 {offsets = [0, 96], sizes = [2, 32], strides = [1, 1]} : vector<2x128xf32> to vector<2x32xf32>
    %304 = math.tanh %303 : vector<2x32xf32>
    %305 = vector.extract_strided_slice %294 {offsets = [0, 32], sizes = [2, 32], strides = [1, 1]} : vector<2x96xf32> to vector<2x32xf32>
    %306 = arith.mulf %305, %264 : vector<2x32xf32>
    %307 = vector.extract_strided_slice %294 {offsets = [0, 0], sizes = [2, 32], strides = [1, 1]} : vector<2x96xf32> to vector<2x32xf32>
    %308 = arith.mulf %307, %302 : vector<2x32xf32>
    %309 = arith.addf %306, %308 : vector<2x32xf32>
    %310 = vector.extract_strided_slice %300 {offsets = [0, 32], sizes = [2, 32], strides = [1, 1]} : vector<2x96xf32> to vector<2x32xf32>
    %311 = arith.mulf %310, %269 : vector<2x32xf32>
    %312 = vector.extract_strided_slice %300 {offsets = [0, 0], sizes = [2, 32], strides = [1, 1]} : vector<2x96xf32> to vector<2x32xf32>
    %313 = arith.mulf %312, %304 : vector<2x32xf32>
    %314 = arith.addf %311, %313 : vector<2x32xf32>
    %315 = vector.extract_strided_slice %294 {offsets = [0, 64], sizes = [2, 32], strides = [1, 1]} : vector<2x96xf32> to vector<2x32xf32>
    %316 = math.tanh %309 : vector<2x32xf32>
    %317 = arith.mulf %315, %316 : vector<2x32xf32>
    %318 = vector.extract_strided_slice %300 {offsets = [0, 64], sizes = [2, 32], strides = [1, 1]} : vector<2x96xf32> to vector<2x32xf32>
    %319 = math.tanh %314 : vector<2x32xf32>
    %320 = arith.mulf %318, %319 : vector<2x32xf32>
    %321 = tpu.concatenate %317, %320 in 1 : vector<2x32xf32>, vector<2x32xf32> -> vector<2x64xf32>
    %c7_i32_62 = arith.constant 7 : i32
    %cst_63 = arith.constant dense<0.000000e+00> : vector<2x256xf32>
    %322 = tpu.matmul %321, %3, %cst_63 {dimension_numbers = #tpu.dot_dimension_numbers<[1], [0], [0], [1], [0, 0, 1, 1], [], []>} : vector<2x64xf32>, vector<64x256xf32>, vector<2x256xf32> -> vector<2x256xf32>
    %323 = vector.extract_strided_slice %322 {offsets = [0, 0], sizes = [2, 128], strides = [1, 1]} : vector<2x256xf32> to vector<2x128xf32>
    %324 = arith.index_cast %c7_i32_62 : i32 to index
    %c0_64 = arith.constant 0 : index
    %c0_65 = arith.constant 0 : index
    %325 = vector.load %arg1[%324, %c0_64, %c0_65] : memref<8x2x128xf32, #tpu.memory_space<vmem>>, vector<1x2x128xf32>
    %326 = vector.shape_cast %325 : vector<1x2x128xf32> to vector<2x128xf32>
    %327 = arith.addf %323, %326 : vector<2x128xf32>
    %328 = vector.extract_strided_slice %322 {offsets = [0, 128], sizes = [2, 128], strides = [1, 1]} : vector<2x256xf32> to vector<2x128xf32>
    %c7_i32_66 = arith.constant 7 : i32
    %329 = arith.subi %c7_i32_66, %c7_i32_62 : i32
    %330 = arith.index_cast %329 : i32 to index
    %c0_67 = arith.constant 0 : index
    %c0_68 = arith.constant 0 : index
    %331 = vector.load %arg2[%330, %c0_67, %c0_68] : memref<8x2x128xf32, #tpu.memory_space<vmem>>, vector<1x2x128xf32>
    %332 = vector.shape_cast %331 : vector<1x2x128xf32> to vector<2x128xf32>
    %333 = arith.addf %328, %332 : vector<2x128xf32>
    %334 = vector.extract_strided_slice %327 {offsets = [0, 0], sizes = [2, 96], strides = [1, 1]} : vector<2x128xf32> to vector<2x96xf32>
    %335 = arith.negf %334 : vector<2x96xf32>
    %336 = math.exp %335 : vector<2x96xf32>
    %cst_69 = arith.constant 1.000000e+00 : f32
    %337 = vector.broadcast %cst_69 : f32 to vector<2x96xf32>
    %338 = arith.addf %337, %336 : vector<2x96xf32>
    %339 = arith.divf %337, %338 : vector<2x96xf32>
    %340 = vector.extract_strided_slice %333 {offsets = [0, 0], sizes = [2, 96], strides = [1, 1]} : vector<2x128xf32> to vector<2x96xf32>
    %341 = arith.negf %340 : vector<2x96xf32>
    %342 = math.exp %341 : vector<2x96xf32>
    %cst_70 = arith.constant 1.000000e+00 : f32
    %343 = vector.broadcast %cst_70 : f32 to vector<2x96xf32>
    %344 = arith.addf %343, %342 : vector<2x96xf32>
    %345 = arith.divf %343, %344 : vector<2x96xf32>
    %346 = vector.extract_strided_slice %327 {offsets = [0, 96], sizes = [2, 32], strides = [1, 1]} : vector<2x128xf32> to vector<2x32xf32>
    %347 = math.tanh %346 : vector<2x32xf32>
    %348 = vector.extract_strided_slice %333 {offsets = [0, 96], sizes = [2, 32], strides = [1, 1]} : vector<2x128xf32> to vector<2x32xf32>
    %349 = math.tanh %348 : vector<2x32xf32>
    %350 = vector.extract_strided_slice %339 {offsets = [0, 32], sizes = [2, 32], strides = [1, 1]} : vector<2x96xf32> to vector<2x32xf32>
    %351 = arith.mulf %350, %309 : vector<2x32xf32>
    %352 = vector.extract_strided_slice %339 {offsets = [0, 0], sizes = [2, 32], strides = [1, 1]} : vector<2x96xf32> to vector<2x32xf32>
    %353 = arith.mulf %352, %347 : vector<2x32xf32>
    %354 = arith.addf %351, %353 : vector<2x32xf32>
    %355 = vector.extract_strided_slice %345 {offsets = [0, 32], sizes = [2, 32], strides = [1, 1]} : vector<2x96xf32> to vector<2x32xf32>
    %356 = arith.mulf %355, %314 : vector<2x32xf32>
    %357 = vector.extract_strided_slice %345 {offsets = [0, 0], sizes = [2, 32], strides = [1, 1]} : vector<2x96xf32> to vector<2x32xf32>
    %358 = arith.mulf %357, %349 : vector<2x32xf32>
    %359 = arith.addf %356, %358 : vector<2x32xf32>
    %360 = vector.extract_strided_slice %339 {offsets = [0, 64], sizes = [2, 32], strides = [1, 1]} : vector<2x96xf32> to vector<2x32xf32>
    %361 = math.tanh %354 : vector<2x32xf32>
    %362 = arith.mulf %360, %361 : vector<2x32xf32>
    %363 = vector.extract_strided_slice %345 {offsets = [0, 64], sizes = [2, 32], strides = [1, 1]} : vector<2x96xf32> to vector<2x32xf32>
    %364 = math.tanh %359 : vector<2x32xf32>
    %365 = arith.mulf %363, %364 : vector<2x32xf32>
    %366 = tpu.concatenate %362, %365 in 1 : vector<2x32xf32>, vector<2x32xf32> -> vector<2x64xf32>
    %c8_i32 = arith.constant 8 : i32
    %c0_71 = arith.constant 0 : index
    %c0_72 = arith.constant 0 : index
    %367 = vector.load %arg5[%c0_71, %c0_72] : memref<2x64xf32, #tpu.memory_space<vmem>>, vector<2x64xf32>
    tpu.vector_store %arg5[%c0_71, %c0_72], %366 {strides = array<i32>} : memref<2x64xf32, #tpu.memory_space<vmem>>, vector<2x64xf32>,
    %c0_73 = arith.constant 0 : index
    %c0_74 = arith.constant 0 : index
    %368 = vector.load %arg6[%c0_73, %c0_74] : memref<2x64xf32, #tpu.memory_space<vmem>>, vector<2x32xf32>
    tpu.vector_store %arg6[%c0_73, %c0_74], %354 {strides = array<i32>} : memref<2x64xf32, #tpu.memory_space<vmem>>, vector<2x32xf32>,
    %c0_75 = arith.constant 0 : index
    %c32_76 = arith.constant 32 : index
    %369 = vector.load %arg6[%c0_75, %c32_76] : memref<2x64xf32, #tpu.memory_space<vmem>>, vector<2x32xf32>
    tpu.vector_store %arg6[%c0_75, %c32_76], %359 {strides = array<i32>} : memref<2x64xf32, #tpu.memory_space<vmem>>, vector<2x32xf32>,
    %c0_i32_77 = arith.constant 0 : i32
    %370 = arith.cmpi eq, %arg0, %c0_i32_77 : i32
    %371 = arith.extui %370 : i1 to i32
    %c0_i32_78 = arith.constant 0 : i32
    %372 = arith.cmpi ne, %371, %c0_i32_78 : i32
    scf.if %372 {
      %373 = vector.extract_strided_slice %366 {offsets = [0, 0], sizes = [2, 32], strides = [1, 1]} : vector<2x64xf32> to vector<2x32xf32>
      %374 = vector.extract_strided_slice %366 {offsets = [0, 32], sizes = [2, 32], strides = [1, 1]} : vector<2x64xf32> to vector<2x32xf32>
      %375 = arith.addf %373, %374 : vector<2x32xf32>
      %c0_79 = arith.constant 0 : index
      %c0_80 = arith.constant 0 : index
      %376 = vector.load %arg4[%c0_79, %c0_80] : memref<2x32xf32, #tpu.memory_space<vmem>>, vector<2x32xf32>
      tpu.vector_store %arg4[%c0_79, %c0_80], %375 {strides = array<i32>} : memref<2x32xf32, #tpu.memory_space<vmem>>, vector<2x32xf32>,
    } else {
    }
    return
  }
  func.func @transform_0(%arg0: i32) -> (i32, i32, i32) {
    %c0_i32 = arith.constant 0 : i32
    %c0_i32_0 = arith.constant 0 : i32
    %c0_i32_1 = arith.constant 0 : i32
    return %arg0, %c0_i32, %c0_i32_0 : i32, i32, i32
  }
  func.func @transform_1(%arg0: i32) -> (i32, i32, i32) {
    %c0_i32 = arith.constant 0 : i32
    %0 = arith.subi %c0_i32, %arg0 : i32
    %c0_i32_0 = arith.constant 0 : i32
    %c1_i32 = arith.constant 1 : i32
    %c0_i32_1 = arith.constant 0 : i32
    return %0, %c0_i32_0, %c1_i32 : i32, i32, i32
  }
  func.func @transform_2(%arg0: i32) -> (i32, i32) {
    %c0_i32 = arith.constant 0 : i32
    %c0_i32_0 = arith.constant 0 : i32
    %c0_i32_1 = arith.constant 0 : i32
    return %c0_i32, %c0_i32_0 : i32, i32
  }
  func.func @transform_3(%arg0: i32) -> (i32, i32) {
    %c0_i32 = arith.constant 0 : i32
    %c0_i32_0 = arith.constant 0 : i32
    %c0_i32_1 = arith.constant 0 : i32
    return %c0_i32, %c0_i32_0 : i32, i32
  }
}

</mosaic_0001>

<bundles_post_ra>
// kernel: tpu_custom_call.1
= control target key start
LH: loop header
LB: loop body
LE: loop exit
PB: predicated region body
PF: predicated region fallthrough
CT: control target
= control target key end

     0   :  { %8 = vsyncpa [#allocation5], 0  ;;  %s1895_s0 = inlined_call_operand.hbm [shape: f32[8,2,256], index: 0, kind: input, shape index: {}]   ;;  %s1896_s1 = inlined_call_operand.hbm [shape: f32[8,2,256], index: 1, kind: input, shape index: {}]   ;;  %s1897_s2 = inlined_call_operand.hbm [shape: f32[64,256], index: 2, kind: input, shape index: {}]   ;;  %s1898_s3 = inlined_call_operand.hbm [shape: f32[2,32], index: 3, kind: output, shape index: {}]  }
   0x1   :  { %9 = vsyncpa [#allocation8], 0 }
   0x2   :  { %10 = vsyncpa [#allocation6], 0  ;;  %s1650_s14 = scalar_lea.hbm %s1896_s1, 32  ;;  %s1616_s15 = smov [#allocation7]  }
   0x3   :  { %s34_s16 = sshll.u32 %s1616_s15, 4  ;;  %s1617_s17 = smov [#allocation4]   ;;  %s35_s16 = int_to_ptr.vmem [resolvable:$true] %s34_s16 }
   0x4   :  { %s16_s18 = sshll.u32 %s1617_s17, 4  ;;  %s1543_s21 = scalar_lea.hbm %s1896_s1, 288  ;;  %s1652_s18 = int_to_ptr.vmem [resolvable:$true] %s16_s18 }
   0x5   :  { %p1520_p0 = scmp.ne.s32.totalorder %s1650_s14, %s1543_s21  ;;  %s1521_s24 = scalar_lea.hbm %s1896_s1, 512 }
   0x6   :  { %p1522_p1 = scmp.lt.u32.totalorder %s1650_s14, %s1896_s1  ;;  %p1523_p2 = scmp.lt.u32.totalorder %s1521_s24, %s1543_s21 }
   0x7   :  { %p1525_p4 = scmp.lt.u32.totalorder %s1543_s21, %s1650_s14 }
   0x8   :  { %p1524_p3 = por %p1523_p2, %p1522_p1 }
   0xa   :  { %p1526_p5 = por %p1525_p4, %p1524_p3 }
   0xc   :  { %p1527_p6 = pnand %p1526_p5, %p1520_p0 }
   0xe   :  { %1530 = shalt.err (!%p1527_p6)
}
   0xf   :  { %s1531_s27 = scalar_lea.vmem %s35_s16, 256  ;;  %p1536_p8 = scmp.lt.s32.totalorder %s35_s16, %s35_s16 }
  0x10   :  { %p1532_p7 = scmp.ne.s32.totalorder %s35_s16, %s1531_s27  ;;  %p1537_p9 = scmp.lt.s32.totalorder %s1531_s27, %s1531_s27 }
  0x12   :  { %p1538_p10 = por %p1537_p9, %p1536_p8 }
  0x14   :  { %p1539_p11 = pnand %p1538_p10, %p1532_p7 }
  0x16   :  { %1542 = shalt.err (!%p1539_p11)
}
  0x17   :  { %s1618_s28 = smov 64   ;;  %s1619_s29 = smov 32  }
  0x18   :  { %s1620_s30 = smov 2   ;;  %s1544_s5 = scalar_lea.hbm %s1895_s0, 256 }
  0x19   :  { %40 = dma.hbm_to_vmem [thread:$0]  %s1650_s14, 256, %s35_s16, [#allocation8], %s1618_s28, %s1619_s29, %s1620_s30  }
  0x1a   :  { %p1545_p12 = scmp.ne.s32.totalorder %s1895_s0, %s1544_s5  ;;  %s1546_s10 = scalar_lea.hbm %s1895_s0, 512 }
  0x1b   :  { %p1547_p13 = scmp.lt.u32.totalorder %s1546_s10, %s1544_s5  ;;  %p1548_p0 = scmp.lt.u32.totalorder %s1544_s5, %s1895_s0 }
  0x1d   :  { %p1549_p1 = por %p1548_p0, %p1547_p13 }
  0x1f   :  { %p1550_p2 = pnand %p1549_p1, %p1545_p12 }
  0x21   :  { %1553 = shalt.err (!%p1550_p2)
}
  0x22   :  { %s1554_s13 = scalar_lea.vmem %s1652_s18, 256  ;;  %p1559_p4 = scmp.lt.s32.totalorder %s1652_s18, %s1652_s18 }
  0x23   :  { %p1555_p3 = scmp.ne.s32.totalorder %s1652_s18, %s1554_s13  ;;  %p1560_p5 = scmp.lt.s32.totalorder %s1554_s13, %s1554_s13 }
  0x25   :  { %p1561_p6 = por %p1560_p5, %p1559_p4 }
  0x27   :  { %p1562_p7 = pnand %p1561_p6, %p1555_p3 }
  0x29   :  { %1565 = shalt.err (!%p1562_p7)
}
  0x2a   :  { %22 = dma.hbm_to_vmem [thread:$0]  %s1895_s0, 256, %s1652_s18, [#allocation5], %s1618_s28, %s1619_s29, %s1620_s30  }
  0x2b   :  { %s1621_s16 = smov [#allocation9]   ;;  %s1566_s21 = scalar_lea.hbm %s1897_s2, 2048 }
  0x2c   :  { %s46_s17 = sshll.u32 %s1621_s16, 4  ;;  %p1567_p8 = scmp.ne.s32.totalorder %s1897_s2, %s1566_s21  ;;  %s47_s17 = int_to_ptr.vmem [resolvable:$true] %s46_s17 }
  0x2d   :  { %p1570_p9 = scmp.lt.u32.totalorder %s1566_s21, %s1897_s2 }
  0x2f   :  { %p1572_p10 = pnand %p1570_p9, %p1567_p8 }
  0x31   :  { %1575 = shalt.err (!%p1572_p10)
}
  0x32   :  { %s1576_s26 = scalar_lea.vmem %s47_s17, 2048  ;;  %p1581_p12 = scmp.lt.s32.totalorder %s47_s17, %s47_s17 }
  0x33   :  { %p1577_p11 = scmp.ne.s32.totalorder %s47_s17, %s1576_s26  ;;  %p1582_p13 = scmp.lt.s32.totalorder %s1576_s26, %s1576_s26 }
  0x35   :  { %p1583_p0 = por %p1582_p13, %p1581_p12 }
  0x37   :  { %p1584_p1 = pnand %p1583_p0, %p1577_p11 }
  0x39   :  { %1587 = shalt.err (!%p1584_p1)
}
  0x3a   :  { %s1622_s0 = smov 256   ;;  %s1623_s18 = smov 16  }
  0x3b   :  { %52 = dma.hbm_to_vmem [thread:$0]  %s1897_s2, 2048, %s47_s17, [#allocation8], %s1622_s0, %s1622_s0, %s1623_s18  }
  0x3c   :  { %1610 = dma.done.wait [#allocation5], 256  }
  0x3d   :  { %1611 = vsyncadd [#allocation5], 4294967040 }
  0x3e   :  { %1612 = dma.done.wait [#allocation8], 2304  }
  0x3f   :  { %1613 = vsyncadd [#allocation8], 4294964992  ;;  %vm68_vm0 = vcmask 517120   ;;  %v1624_v0 = vmov 0.0   ;;  %v72_v1 = vld [vmem:[#allocation9 + $0x8] sm:$0xff]  ;;  %v74_v2 = vld [vmem:[#allocation9 + $0x18] sm:$0xff] }
  0x40   :  { %157 = vmatprep.mubr.f32.mxu0 %v1624_v0  ;;  %69 = vst.msk [vmem:[#allocation2] sm:$0x3] %vm68_vm0, %v1624_v0  ;;  %70 = vst.msk [vmem:[#allocation3] sm:$0x3] %vm68_vm0, %v1624_v0  ;;  %298 = vmatprep.mubr.f32.mxu1 %v1624_v0  ;;  %v71_v3 = vld [vmem:[#allocation9] sm:$0xff]  ;;  %v1709_v4 = vpack.c.bf16 %v74_v2, %v72_v1  ;;  %v73_v5 = vld [vmem:[#allocation9 + $0x10] sm:$0xff] }
  0x41   :  { %v76_v6 = vld [vmem:[#allocation9 + $0x28] sm:$0xff]  ;;  %v78_v7 = vld [vmem:[#allocation9 + $0x38] sm:$0xff]  ;;  %v1711_v8 = vpack.c.bf16 %v73_v5, %v71_v3  ;;  %v75_v10 = vld [vmem:[#allocation9 + $0x20] sm:$0xff]  ;;  %vm89_vm1 = vcmask 523264   ;;  %s1625_s2 = smov 96   ;;  %vm229_vm2 = vcmask 261120  }
  0x42   :  { %v1713_v9 = vpack.c.bf16 %v78_v7, %v76_v6  ;;  %v77_v11 = vld [vmem:[#allocation9 + $0x30] sm:$0xff]  ;;  %v80_v12 = vld [vmem:[#allocation9 + $0x48] sm:$0xff]  ;;  %1253 = vmatprep.subr.bf16.mxu0 %v1709_v4  ;;  %v82_v13 = vld [vmem:[#allocation9 + $0x58] sm:$0xff]  ;;  %1269 = vmatprep.subr.bf16.mxu1 %v1709_v4  ;;  %vm1195_vm3 = vcmask 254976   ;;  %vm1197_vm4 = vcmask 517376  }
  0x43   :  { %1255 = vmatpush1.bf16.msra.mxu0 %v1711_v8  ;;  %v1718_v14 = vpack.c.bf16 %v77_v11, %v75_v10  ;;  %1271 = vmatpush1.bf16.msra.mxu1 %v1711_v8  ;;  %v1722_v15 = vpack.c.bf16 %v82_v13, %v80_v12  ;;  %v79_v16 = vld [vmem:[#allocation9 + $0x40] sm:$0xff]  ;;  %v81_v17 = vld [vmem:[#allocation9 + $0x50] sm:$0xff]  ;;  %v84_v19 = vld [vmem:[#allocation9 + $0x68] sm:$0xff] }
  0x44   :  { %1257 = vmatprep.subr.bf16.mxu0 %v1713_v9  ;;  %1273 = vmatprep.subr.bf16.mxu1 %v1713_v9  ;;  %v86_v20 = vld [vmem:[#allocation9 + $0x78] sm:$0xff]  ;;  %v1730_v21 = vpack.c.bf16 %v81_v17, %v79_v16  ;;  %v83_v23 = vld [vmem:[#allocation9 + $0x60] sm:$0xff]  ;;  %v85_v24 = vld [vmem:[#allocation9 + $0x70] sm:$0xff] }
  0x45   :  { %v1734_v22 = vpack.c.bf16 %v86_v20, %v84_v19  ;;  %v1738_v25 = vpack.c.bf16 %v85_v24, %v83_v23  ;;  %v164_v27 = vld [vmem:[#allocation4] sm:$0x3]  ;;  %v167_v29 = vld [vmem:[#allocation7 + $0xe] sm:$0x3]  ;;  %v306_v63 = vld [vmem:[#allocation4 + $0x2] sm:$0x3] }
  0x46   :  { %v309_v1 = vld [vmem:[#allocation7 + $0xc] sm:$0x3] }
  0x47   :  { %v1724_v18 = vld [vmem:[#allocation3] sm:$0x3]  ;;  %1259 = vmatpush1.bf16.msra.mxu0 %v1718_v14  ;;  %1275 = vmatpush1.bf16.msra.mxu1 %v1718_v14  ;;  %v87_v26 = vld [vmem:[#allocation2] sm:$0x3] }
  0x48   :  { %184 = vrot.lane.b32.xlu1 %v1724_v18, %s1619_s29  ;;  %1261 = vmatprep.subr.bf16.mxu0 %v1722_v15 }
  0x49   :  { %1277 = vmatprep.subr.bf16.mxu1 %v1722_v15 }
  0x4b   :  { %1263 = vmatpush1.bf16.msra.mxu0 %v1730_v21  ;;  %1279 = vmatpush1.bf16.msra.mxu1 %v1730_v21 }
  0x4c   :  { %1265 = vmatprep.subr.bf16.mxu0 %v1734_v22  ;;  %1281 = vmatprep.subr.bf16.mxu1 %v1734_v22 }
  0x4f   :  { %1267 = vmatpush1.bf16.msra.mxu0 %v1738_v25  ;;  %1283 = vmatpush1.bf16.msra.mxu1 %v1738_v25 }
  0x50   :  { %1285 = vmatprep.subr.bf16.mxu0 %v1709_v4  ;;  %1301 = vmatprep.subr.bf16.mxu1 %v1709_v4 }
  0x52   :  { %1228 = vmatmul.mubr.msk.f32.vlgmr.msra.gmra.mrb[0].mxu0 %vm89_vm1, %v87_v26 }
  0x53   :  { %1287 = vmatpush1.bf16.msra.mxu0 %v1711_v8  ;;  %435 = vmatprep.mubr.f32.mxu0 %v1624_v0 }
  0x54   :  { %1289 = vmatprep.subr.bf16.mxu0 %v1713_v9 }
  0x57   :  { %1291 = vmatpush1.bf16.msra.mxu0 %v1718_v14 }
  0x58   :  { %1293 = vmatprep.subr.bf16.mxu0 %v1722_v15 }
  0x5b   :  { %1295 = vmatpush1.bf16.msra.mxu0 %v1730_v21 }
  0x5c   :  { %1297 = vmatprep.subr.bf16.mxu0 %v1734_v22 }
  0x5f   :  { %1299 = vmatpush1.bf16.msra.mxu0 %v1738_v25 }
  0x60   :  { %1317 = vmatprep.subr.bf16.mxu0 %v1709_v4 }
  0xba   :  { %v185_v47 = vpop.permute.xlu1 %184 }
 0x125   :  { %v159_v28 = vpop.f32.mrb[0].mxu0 }
 0x126   :  { %v165_v30 = vadd.f32 %v164_v27, %v159_v28  ;;  %v161_v31 = vpop.f32.mrb[1].mxu0 }
 0x127   :  { %v168_v32 = vadd.f32 %v167_v29, %v161_v31 }
 0x128   :  { %1391 = vtanh.f32 %v165_v30  ;;  %v1229_v35 = vmul.f32 -1.442695, %v165_v30 }
 0x129   :  { %1393 = vtanh.f32 %v168_v32  ;;  %v1230_v36 = vmul.f32 -1.442695, %v168_v32 }
 0x12a   :  { %1395 = vpow2.f32 %v1229_v35 }
 0x12b   :  { %1397 = vpow2.f32 %v1230_v36 }
 0x132   :  { %v1392_v33 = vpop.eup %1391 }
 0x133   :  { %189 = vrot.lane.b32.xlu0 %v1392_v33, %s1619_s29  ;;  %v1394_v34 = vpop.eup %1393 }
 0x134   :  { %v1396_v37 = vpop.eup %1395 }
 0x135   :  { %v172_v38 = vadd.f32 1.0, %v1396_v37  ;;  %v1398_v39 = vpop.eup %1397 }
 0x136   :  { %v178_v40 = vadd.f32 1.0, %v1398_v39 }
 0x137   :  { %200 = vrot.lane.b32.xlu0 %v1394_v34, %s1619_s29  ;;  %1399 = vrcp.f32 %v172_v38 }
 0x138   :  { %1401 = vrcp.f32 %v178_v40 }
 0x141   :  { %v1400_v41 = vpop.eup %1399 }
 0x142   :  { %v1402_v44 = vpop.eup %1401  ;;  %v187_v48 = vmul.f32 %v1400_v41, %v185_v47 }
 0x143   :  { %v198_v51 = vmul.f32 %v1402_v44, %v1724_v18 }
 0x1a5   :  { %v190_v42 = vpop.permute.xlu0 %189 }
 0x1a6   :  { %v192_v43 = vmul.f32 %v1400_v41, %v190_v42 }
 0x1a8   :  { %194 = vrot.lane.b32.xlu1 %v192_v43, %s1619_s29  ;;  %v443_v43 = vld [vmem:[#allocation4 + $0x4] sm:$0x3] }
 0x1a9   :  { %v201_v45 = vpop.permute.xlu0 %200 }
 0x1aa   :  { %v203_v46 = vmul.f32 %v1402_v44, %v201_v45 }
 0x1ac   :  { %205 = vrot.lane.b32.xlu0 %v203_v46, %s1619_s29 }
 0x21a   :  { %v195_v49 = vpop.permute.xlu1 %194 }
 0x21b   :  { %v197_v50 = vadd.f32 %v195_v49, %v187_v48 }
 0x21d   :  { %1403 = vtanh.f32 %v197_v50 }
 0x21e   :  { %v206_v52 = vpop.permute.xlu0 %205 }
 0x21f   :  { %v208_v53 = vadd.f32 %v206_v52, %v198_v51 }
 0x221   :  { %1405 = vtanh.f32 %v208_v53 }
 0x227   :  { %v1404_v54 = vpop.eup %1403 }
 0x228   :  { %211 = vrot.lane.b32.xlu1 %v1404_v54, %s1619_s29 }
 0x22b   :  { %v1406_v55 = vpop.eup %1405 }
 0x22c   :  { %217 = vrot.lane.b32.xlu0 %v1406_v55, %s1619_s29 }
 0x29a   :  { %v212_v56 = vpop.permute.xlu1 %211 }
 0x29b   :  { %v214_v57 = vmul.f32 %v1400_v41, %v212_v56 }
 0x29d   :  { %222 = vrot.lane.b32.xlu1 %v214_v57, %s1618_s28 }
 0x29e   :  { %v218_v58 = vpop.permute.xlu0 %217 }
 0x29f   :  { %v220_v59 = vmul.f32 %v1402_v44, %v218_v58  ;;  %v446_v44 = vld [vmem:[#allocation7 + $0xa] sm:$0x3] }
 0x2a1   :  { %226 = vrot.lane.b32.xlu0 %v220_v59, %s1625_s2 }
 0x30f   :  { %v223_v60 = vpop.permute.xlu1 %222 }
 0x313   :  { %v227_v61 = vpop.permute.xlu0 %226 }
 0x314   :  { %v230_v62 = vsel %vm229_vm2, %v223_v60, %v227_v61 }
 0x315   :  { %1231 = vmatmul.mubr.msk.f32.vlgmr.msra.gmra.mrb[0].mxu1 %vm89_vm1, %v230_v62 }
 0x316   :  { %1303 = vmatpush1.bf16.msra.mxu1 %v1711_v8  ;;  %572 = vmatprep.mubr.f32.mxu1 %v1624_v0 }
 0x317   :  { %1305 = vmatprep.subr.bf16.mxu1 %v1713_v9 }
 0x31a   :  { %1307 = vmatpush1.bf16.msra.mxu1 %v1718_v14 }
 0x31b   :  { %1309 = vmatprep.subr.bf16.mxu1 %v1722_v15 }
 0x31e   :  { %1311 = vmatpush1.bf16.msra.mxu1 %v1730_v21 }
 0x31f   :  { %1313 = vmatprep.subr.bf16.mxu1 %v1734_v22 }
 0x322   :  { %1315 = vmatpush1.bf16.msra.mxu1 %v1738_v25 }
 0x323   :  { %1333 = vmatprep.subr.bf16.mxu1 %v1709_v4 }
 0x3e8   :  { %v300_v2 = vpop.f32.mrb[0].mxu1 }
 0x3e9   :  { %v307_v3 = vadd.f32 %v306_v63, %v300_v2  ;;  %v302_v5 = vpop.f32.mrb[1].mxu1 }
 0x3ea   :  { %v310_v6 = vadd.f32 %v309_v1, %v302_v5 }
 0x3eb   :  { %1407 = vtanh.f32 %v307_v3  ;;  %v1232_v11 = vmul.f32 -1.442695, %v307_v3 }
 0x3ec   :  { %1409 = vtanh.f32 %v310_v6  ;;  %v1233_v12 = vmul.f32 -1.442695, %v310_v6 }
 0x3ed   :  { %1411 = vpow2.f32 %v1232_v11 }
 0x3ee   :  { %1413 = vpow2.f32 %v1233_v12 }
 0x3f5   :  { %v1408_v7 = vpop.eup %1407 }
 0x3f6   :  { %v1410_v10 = vpop.eup %1409  ;;  %327 = vrot.lane.b32.xlu1 %v1408_v7, %s1619_s29 }
 0x3f7   :  { %338 = vrot.lane.b32.xlu0 %v1410_v10, %s1619_s29  ;;  %v1412_v13 = vpop.eup %1411 }
 0x3f8   :  { %v1414_v16 = vpop.eup %1413  ;;  %v314_v17 = vadd.f32 1.0, %v1412_v13 }
 0x3f9   :  { %v320_v18 = vadd.f32 1.0, %v1414_v16 }
 0x3fa   :  { %1415 = vrcp.f32 %v314_v17 }
 0x3fb   :  { %1417 = vrcp.f32 %v320_v18 }
 0x404   :  { %v1416_v19 = vpop.eup %1415 }
 0x405   :  { %v1418_v23 = vpop.eup %1417  ;;  %v325_v28 = vmul.f32 %v1416_v19, %v197_v50 }
 0x406   :  { %v336_v30 = vmul.f32 %v1418_v23, %v208_v53 }
 0x468   :  { %v328_v20 = vpop.permute.xlu1 %327 }
 0x469   :  { %v330_v24 = vmul.f32 %v1416_v19, %v328_v20  ;;  %v339_v26 = vpop.permute.xlu0 %338  ;;  %v580_v20 = vld [vmem:[#allocation4 + $0x6] sm:$0x3] }
 0x46a   :  { %v341_v27 = vmul.f32 %v1418_v23, %v339_v26 }
 0x46b   :  { %332 = vrot.lane.b32.xlu1 %v330_v24, %s1619_s29 }
 0x46c   :  { %343 = vrot.lane.b32.xlu0 %v341_v27, %s1619_s29 }
 0x4dd   :  { %v333_v29 = vpop.permute.xlu1 %332 }
 0x4de   :  { %v335_v31 = vadd.f32 %v333_v29, %v325_v28  ;;  %v344_v32 = vpop.permute.xlu0 %343 }
 0x4df   :  { %v346_v33 = vadd.f32 %v344_v32, %v336_v30 }
 0x4e0   :  { %1419 = vtanh.f32 %v335_v31 }
 0x4e1   :  { %1421 = vtanh.f32 %v346_v33 }
 0x4ea   :  { %v1420_v34 = vpop.eup %1419 }
 0x4eb   :  { %v1422_v35 = vpop.eup %1421  ;;  %349 = vrot.lane.b32.xlu1 %v1420_v34, %s1619_s29 }
 0x4ec   :  { %355 = vrot.lane.b32.xlu0 %v1422_v35, %s1619_s29 }
 0x55d   :  { %v350_v36 = vpop.permute.xlu1 %349 }
 0x55e   :  { %v352_v37 = vmul.f32 %v1416_v19, %v350_v36  ;;  %v356_v38 = vpop.permute.xlu0 %355 }
 0x55f   :  { %v358_v39 = vmul.f32 %v1418_v23, %v356_v38  ;;  %v583_v23 = vld [vmem:[#allocation7 + $0x8] sm:$0x3] }
 0x560   :  { %360 = vrot.lane.b32.xlu1 %v352_v37, %s1618_s28 }
 0x561   :  { %364 = vrot.lane.b32.xlu0 %v358_v39, %s1625_s2 }
 0x5d2   :  { %v361_v40 = vpop.permute.xlu1 %360 }
 0x5d3   :  { %v365_v41 = vpop.permute.xlu0 %364 }
 0x5d4   :  { %v367_v42 = vsel %vm229_vm2, %v361_v40, %v365_v41 }
 0x5d5   :  { %1234 = vmatmul.mubr.msk.f32.vlgmr.msra.gmra.mrb[2].mxu0 %vm89_vm1, %v367_v42 }
 0x5d6   :  { %1319 = vmatpush1.bf16.msra.mxu0 %v1711_v8  ;;  %709 = vmatprep.mubr.f32.mxu0 %v1624_v0 }
 0x5d7   :  { %1321 = vmatprep.subr.bf16.mxu0 %v1713_v9 }
 0x5da   :  { %1323 = vmatpush1.bf16.msra.mxu0 %v1718_v14 }
 0x5db   :  { %1325 = vmatprep.subr.bf16.mxu0 %v1722_v15 }
 0x5de   :  { %1327 = vmatpush1.bf16.msra.mxu0 %v1730_v21 }
 0x5df   :  { %1329 = vmatprep.subr.bf16.mxu0 %v1734_v22 }
 0x5e2   :  { %1331 = vmatpush1.bf16.msra.mxu0 %v1738_v25 }
 0x5e3   :  { %1349 = vmatprep.subr.bf16.mxu0 %v1709_v4 }
 0x6a8   :  { %v437_v45 = vpop.f32.mrb[2].mxu0 }
 0x6a9   :  { %v444_v46 = vadd.f32 %v443_v43, %v437_v45  ;;  %v439_v47 = vpop.f32.mrb[3].mxu0 }
 0x6aa   :  { %v447_v48 = vadd.f32 %v446_v44, %v439_v47 }
 0x6ab   :  { %1423 = vtanh.f32 %v444_v46  ;;  %v1235_v51 = vmul.f32 -1.442695, %v444_v46 }
 0x6ac   :  { %1425 = vtanh.f32 %v447_v48  ;;  %v1236_v52 = vmul.f32 -1.442695, %v447_v48 }
 0x6ad   :  { %1427 = vpow2.f32 %v1235_v51 }
 0x6ae   :  { %1429 = vpow2.f32 %v1236_v52 }
 0x6b5   :  { %v1424_v49 = vpop.eup %1423 }
 0x6b6   :  { %v1426_v50 = vpop.eup %1425  ;;  %464 = vrot.lane.b32.xlu1 %v1424_v49, %s1619_s29 }
 0x6b7   :  { %475 = vrot.lane.b32.xlu0 %v1426_v50, %s1619_s29  ;;  %v1428_v53 = vpop.eup %1427 }
 0x6b8   :  { %v1430_v54 = vpop.eup %1429  ;;  %v451_v55 = vadd.f32 1.0, %v1428_v53 }
 0x6b9   :  { %v457_v56 = vadd.f32 1.0, %v1430_v54 }
 0x6ba   :  { %1431 = vrcp.f32 %v451_v55 }
 0x6bb   :  { %1433 = vrcp.f32 %v457_v56 }
 0x6c4   :  { %v1432_v57 = vpop.eup %1431 }
 0x6c5   :  { %v1434_v59 = vpop.eup %1433  ;;  %v462_v63 = vmul.f32 %v1432_v57, %v335_v31 }
 0x6c6   :  { %v473_v2 = vmul.f32 %v1434_v59, %v346_v33 }
 0x728   :  { %v465_v58 = vpop.permute.xlu1 %464 }
 0x729   :  { %v467_v60 = vmul.f32 %v1432_v57, %v465_v58  ;;  %v476_v61 = vpop.permute.xlu0 %475  ;;  %v720_v58 = vld [vmem:[#allocation7 + $0x6] sm:$0x3] }
 0x72a   :  { %v478_v62 = vmul.f32 %v1434_v59, %v476_v61 }
 0x72b   :  { %469 = vrot.lane.b32.xlu1 %v467_v60, %s1619_s29 }
 0x72c   :  { %480 = vrot.lane.b32.xlu0 %v478_v62, %s1619_s29 }
 0x79d   :  { %v470_v1 = vpop.permute.xlu1 %469 }
 0x79e   :  { %v472_v3 = vadd.f32 %v470_v1, %v462_v63  ;;  %v481_v5 = vpop.permute.xlu0 %480 }
 0x79f   :  { %v483_v6 = vadd.f32 %v481_v5, %v473_v2 }
 0x7a0   :  { %1435 = vtanh.f32 %v472_v3 }
 0x7a1   :  { %1437 = vtanh.f32 %v483_v6 }
 0x7aa   :  { %v1436_v7 = vpop.eup %1435 }
 0x7ab   :  { %v1438_v10 = vpop.eup %1437  ;;  %486 = vrot.lane.b32.xlu1 %v1436_v7, %s1619_s29 }
 0x7ac   :  { %492 = vrot.lane.b32.xlu0 %v1438_v10, %s1619_s29 }
 0x81d   :  { %v487_v11 = vpop.permute.xlu1 %486 }
 0x81e   :  { %v489_v12 = vmul.f32 %v1432_v57, %v487_v11  ;;  %v493_v13 = vpop.permute.xlu0 %492  ;;  %v717_v57 = vld [vmem:[#allocation4 + $0x8] sm:$0x3] }
 0x81f   :  { %v495_v16 = vmul.f32 %v1434_v59, %v493_v13 }
 0x820   :  { %497 = vrot.lane.b32.xlu1 %v489_v12, %s1618_s28 }
 0x821   :  { %501 = vrot.lane.b32.xlu0 %v495_v16, %s1625_s2 }
 0x892   :  { %v498_v17 = vpop.permute.xlu1 %497 }
 0x893   :  { %v502_v18 = vpop.permute.xlu0 %501 }
 0x894   :  { %v504_v19 = vsel %vm229_vm2, %v498_v17, %v502_v18 }
 0x895   :  { %1237 = vmatmul.mubr.msk.f32.vlgmr.msra.gmra.mrb[2].mxu1 %vm89_vm1, %v504_v19 }
 0x896   :  { %1335 = vmatpush1.bf16.msra.mxu1 %v1711_v8  ;;  %846 = vmatprep.mubr.f32.mxu1 %v1624_v0 }
 0x897   :  { %1337 = vmatprep.subr.bf16.mxu1 %v1713_v9 }
 0x89a   :  { %1339 = vmatpush1.bf16.msra.mxu1 %v1718_v14 }
 0x89b   :  { %1341 = vmatprep.subr.bf16.mxu1 %v1722_v15 }
 0x89e   :  { %1343 = vmatpush1.bf16.msra.mxu1 %v1730_v21 }
 0x89f   :  { %1345 = vmatprep.subr.bf16.mxu1 %v1734_v22 }
 0x8a2   :  { %1347 = vmatpush1.bf16.msra.mxu1 %v1738_v25 }
 0x8a3   :  { %1365 = vmatprep.subr.bf16.mxu1 %v1709_v4 }
 0x968   :  { %v574_v24 = vpop.f32.mrb[2].mxu1 }
 0x969   :  { %v581_v26 = vadd.f32 %v580_v20, %v574_v24  ;;  %v576_v27 = vpop.f32.mrb[3].mxu1 }
 0x96a   :  { %v584_v28 = vadd.f32 %v583_v23, %v576_v27 }
 0x96b   :  { %1439 = vtanh.f32 %v581_v26  ;;  %v1238_v31 = vmul.f32 -1.442695, %v581_v26 }
 0x96c   :  { %1441 = vtanh.f32 %v584_v28  ;;  %v1239_v32 = vmul.f32 -1.442695, %v584_v28 }
 0x96d   :  { %1443 = vpow2.f32 %v1238_v31 }
 0x96e   :  { %1445 = vpow2.f32 %v1239_v32 }
 0x975   :  { %v1440_v29 = vpop.eup %1439 }
 0x976   :  { %v1442_v30 = vpop.eup %1441  ;;  %601 = vrot.lane.b32.xlu1 %v1440_v29, %s1619_s29 }
 0x977   :  { %612 = vrot.lane.b32.xlu0 %v1442_v30, %s1619_s29  ;;  %v1444_v33 = vpop.eup %1443 }
 0x978   :  { %v1446_v4 = vpop.eup %1445  ;;  %v588_v34 = vadd.f32 1.0, %v1444_v33 }
 0x979   :  { %v594_v35 = vadd.f32 1.0, %v1446_v4 }
 0x97a   :  { %1447 = vrcp.f32 %v588_v34 }
 0x97b   :  { %1449 = vrcp.f32 %v594_v35 }
 0x984   :  { %v1448_v36 = vpop.eup %1447 }
 0x985   :  { %v1450_v38 = vpop.eup %1449  ;;  %v599_v42 = vmul.f32 %v1448_v36, %v472_v3 }
 0x986   :  { %v610_v44 = vmul.f32 %v1450_v38, %v483_v6 }
 0x9e8   :  { %v602_v37 = vpop.permute.xlu1 %601 }
 0x9e9   :  { %v604_v39 = vmul.f32 %v1448_v36, %v602_v37  ;;  %v613_v40 = vpop.permute.xlu0 %612  ;;  %v857_v37 = vld [vmem:[#allocation7 + $0x4] sm:$0x3] }
 0x9ea   :  { %v615_v41 = vmul.f32 %v1450_v38, %v613_v40 }
 0x9eb   :  { %606 = vrot.lane.b32.xlu1 %v604_v39, %s1619_s29 }
 0x9ec   :  { %617 = vrot.lane.b32.xlu0 %v615_v41, %s1619_s29 }
 0xa5d   :  { %v607_v43 = vpop.permute.xlu1 %606 }
 0xa5e   :  { %v609_v45 = vadd.f32 %v607_v43, %v599_v42  ;;  %v618_v46 = vpop.permute.xlu0 %617 }
 0xa5f   :  { %v620_v47 = vadd.f32 %v618_v46, %v610_v44 }
 0xa60   :  { %1451 = vtanh.f32 %v609_v45 }
 0xa61   :  { %1453 = vtanh.f32 %v620_v47 }
 0xa6a   :  { %v1452_v48 = vpop.eup %1451 }
 0xa6b   :  { %v1454_v49 = vpop.eup %1453  ;;  %623 = vrot.lane.b32.xlu1 %v1452_v48, %s1619_s29 }
 0xa6c   :  { %629 = vrot.lane.b32.xlu0 %v1454_v49, %s1619_s29 }
 0xadd   :  { %v624_v50 = vpop.permute.xlu1 %623 }
 0xade   :  { %v626_v51 = vmul.f32 %v1448_v36, %v624_v50  ;;  %v630_v52 = vpop.permute.xlu0 %629  ;;  %v854_v36 = vld [vmem:[#allocation4 + $0xa] sm:$0x3] }
 0xadf   :  { %v632_v53 = vmul.f32 %v1450_v38, %v630_v52 }
 0xae0   :  { %634 = vrot.lane.b32.xlu1 %v626_v51, %s1618_s28 }
 0xae1   :  { %638 = vrot.lane.b32.xlu0 %v632_v53, %s1625_s2 }
 0xb52   :  { %v635_v54 = vpop.permute.xlu1 %634 }
 0xb53   :  { %v639_v55 = vpop.permute.xlu0 %638 }
 0xb54   :  { %v641_v56 = vsel %vm229_vm2, %v635_v54, %v639_v55 }
 0xb55   :  { %1240 = vmatmul.mubr.msk.f32.vlgmr.msra.gmra.mrb[4].mxu0 %vm89_vm1, %v641_v56 }
 0xb56   :  { %1351 = vmatpush1.bf16.msra.mxu0 %v1711_v8  ;;  %983 = vmatprep.mubr.f32.mxu0 %v1624_v0 }
 0xb57   :  { %1353 = vmatprep.subr.bf16.mxu0 %v1713_v9 }
 0xb5a   :  { %1355 = vmatpush1.bf16.msra.mxu0 %v1718_v14 }
 0xb5b   :  { %1357 = vmatprep.subr.bf16.mxu0 %v1722_v15 }
 0xb5e   :  { %1359 = vmatpush1.bf16.msra.mxu0 %v1730_v21 }
 0xb5f   :  { %1361 = vmatprep.subr.bf16.mxu0 %v1734_v22 }
 0xb62   :  { %1363 = vmatpush1.bf16.msra.mxu0 %v1738_v25 }
 0xc28   :  { %v711_v59 = vpop.f32.mrb[4].mxu0 }
 0xc29   :  { %v718_v60 = vadd.f32 %v717_v57, %v711_v59  ;;  %v713_v61 = vpop.f32.mrb[5].mxu0 }
 0xc2a   :  { %v721_v62 = vadd.f32 %v720_v58, %v713_v61 }
 0xc2b   :  { %1455 = vtanh.f32 %v718_v60  ;;  %v1241_v2 = vmul.f32 -1.442695, %v718_v60 }
 0xc2c   :  { %1457 = vtanh.f32 %v721_v62  ;;  %v1242_v3 = vmul.f32 -1.442695, %v721_v62 }
 0xc2d   :  { %1459 = vpow2.f32 %v1241_v2 }
 0xc2e   :  { %1461 = vpow2.f32 %v1242_v3 }
 0xc35   :  { %v1456_v63 = vpop.eup %1455 }
 0xc36   :  { %v1458_v1 = vpop.eup %1457  ;;  %738 = vrot.lane.b32.xlu1 %v1456_v63, %s1619_s29  ;;  %v991_v63 = vld [vmem:[#allocation4 + $0xc] sm:$0x3] }
 0xc37   :  { %749 = vrot.lane.b32.xlu0 %v1458_v1, %s1619_s29  ;;  %v1460_v5 = vpop.eup %1459  ;;  %v994_v1 = vld [vmem:[#allocation7 + $0x2] sm:$0x3] }
 0xc38   :  { %v1462_v6 = vpop.eup %1461  ;;  %v725_v7 = vadd.f32 1.0, %v1460_v5 }
 0xc39   :  { %v731_v10 = vadd.f32 1.0, %v1462_v6 }
 0xc3a   :  { %1463 = vrcp.f32 %v725_v7 }
 0xc3b   :  { %1465 = vrcp.f32 %v731_v10 }
 0xc44   :  { %v1464_v11 = vpop.eup %1463 }
 0xc45   :  { %v1466_v13 = vpop.eup %1465  ;;  %v736_v19 = vmul.f32 %v1464_v11, %v609_v45 }
 0xc46   :  { %v747_v23 = vmul.f32 %v1466_v13, %v620_v47 }
 0xca8   :  { %v739_v12 = vpop.permute.xlu1 %738 }
 0xca9   :  { %v741_v16 = vmul.f32 %v1464_v11, %v739_v12  ;;  %v750_v17 = vpop.permute.xlu0 %749 }
 0xcaa   :  { %v752_v18 = vmul.f32 %v1466_v13, %v750_v17 }
 0xcab   :  { %743 = vrot.lane.b32.xlu1 %v741_v16, %s1619_s29 }
 0xcac   :  { %754 = vrot.lane.b32.xlu0 %v752_v18, %s1619_s29 }
 0xd1d   :  { %v744_v20 = vpop.permute.xlu1 %743 }
 0xd1e   :  { %v746_v24 = vadd.f32 %v744_v20, %v736_v19  ;;  %v755_v26 = vpop.permute.xlu0 %754 }
 0xd1f   :  { %v757_v27 = vadd.f32 %v755_v26, %v747_v23 }
 0xd20   :  { %1467 = vtanh.f32 %v746_v24 }
 0xd21   :  { %1469 = vtanh.f32 %v757_v27 }
 0xd2a   :  { %v1468_v28 = vpop.eup %1467 }
 0xd2b   :  { %v1470_v29 = vpop.eup %1469  ;;  %760 = vrot.lane.b32.xlu1 %v1468_v28, %s1619_s29 }
 0xd2c   :  { %766 = vrot.lane.b32.xlu0 %v1470_v29, %s1619_s29 }
 0xd9d   :  { %v761_v30 = vpop.permute.xlu1 %760 }
 0xd9e   :  { %v763_v31 = vmul.f32 %v1464_v11, %v761_v30  ;;  %v767_v32 = vpop.permute.xlu0 %766 }
 0xd9f   :  { %v769_v33 = vmul.f32 %v1466_v13, %v767_v32 }
 0xda0   :  { %771 = vrot.lane.b32.xlu1 %v763_v31, %s1618_s28 }
 0xda1   :  { %775 = vrot.lane.b32.xlu0 %v769_v33, %s1625_s2 }
 0xe12   :  { %v772_v4 = vpop.permute.xlu1 %771 }
 0xe13   :  { %v776_v34 = vpop.permute.xlu0 %775 }
 0xe14   :  { %v778_v35 = vsel %vm229_vm2, %v772_v4, %v776_v34 }
 0xe15   :  { %1243 = vmatmul.mubr.msk.f32.vlgmr.msra.gmra.mrb[4].mxu1 %vm89_vm1, %v778_v35 }
 0xe16   :  { %1367 = vmatpush1.bf16.msra.mxu1 %v1711_v8  ;;  %1120 = vmatprep.mubr.f32.mxu1 %v1624_v0 }
 0xe17   :  { %1369 = vmatprep.subr.bf16.mxu1 %v1713_v9 }
 0xe1a   :  { %1371 = vmatpush1.bf16.msra.mxu1 %v1718_v14 }
 0xe1b   :  { %1373 = vmatprep.subr.bf16.mxu1 %v1722_v15 }
 0xe1e   :  { %1375 = vmatpush1.bf16.msra.mxu1 %v1730_v21 }
 0xe1f   :  { %1377 = vmatprep.subr.bf16.mxu1 %v1734_v22 }
 0xe22   :  { %1379 = vmatpush1.bf16.msra.mxu1 %v1738_v25 }
 0xee8   :  { %v848_v38 = vpop.f32.mrb[4].mxu1 }
 0xee9   :  { %v855_v39 = vadd.f32 %v854_v36, %v848_v38  ;;  %v850_v40 = vpop.f32.mrb[5].mxu1 }
 0xeea   :  { %v858_v8 = vadd.f32 %v857_v37, %v850_v40 }
 0xeeb   :  { %1471 = vtanh.f32 %v855_v39  ;;  %v1244_v14 = vmul.f32 -1.442695, %v855_v39 }
 0xeec   :  { %1473 = vtanh.f32 %v858_v8  ;;  %v1245_v15 = vmul.f32 -1.442695, %v858_v8 }
 0xeed   :  { %1475 = vpow2.f32 %v1244_v14 }
 0xeee   :  { %1477 = vpow2.f32 %v1245_v15 }
 0xef5   :  { %v1472_v0 = vpop.eup %1471 }
 0xef6   :  { %v1474_v9 = vpop.eup %1473  ;;  %875 = vrot.lane.b32.xlu1 %v1472_v0, %s1619_s29  ;;  %v1128_v0 = vld [vmem:[#allocation4 + $0xe] sm:$0x3] }
 0xef7   :  { %886 = vrot.lane.b32.xlu0 %v1474_v9, %s1619_s29  ;;  %v1476_v21 = vpop.eup %1475  ;;  %v1130_v9 = vld [vmem:[#allocation7] sm:$0x3] }
 0xef8   :  { %v1478_v22 = vpop.eup %1477  ;;  %v862_v25 = vadd.f32 1.0, %v1476_v21 }
 0xef9   :  { %v868_v41 = vadd.f32 1.0, %v1478_v22 }
 0xefa   :  { %1479 = vrcp.f32 %v862_v25 }
 0xefb   :  { %1481 = vrcp.f32 %v868_v41 }
 0xf04   :  { %v1480_v42 = vpop.eup %1479 }
 0xf05   :  { %v1482_v44 = vpop.eup %1481  ;;  %v873_v48 = vmul.f32 %v1480_v42, %v746_v24 }
 0xf06   :  { %v884_v50 = vmul.f32 %v1482_v44, %v757_v27 }
 0xf68   :  { %v876_v43 = vpop.permute.xlu1 %875 }
 0xf69   :  { %v878_v45 = vmul.f32 %v1480_v42, %v876_v43  ;;  %v887_v46 = vpop.permute.xlu0 %886 }
 0xf6a   :  { %v889_v47 = vmul.f32 %v1482_v44, %v887_v46 }
 0xf6b   :  { %880 = vrot.lane.b32.xlu1 %v878_v45, %s1619_s29 }
 0xf6c   :  { %891 = vrot.lane.b32.xlu0 %v889_v47, %s1619_s29 }
 0xfdd   :  { %v881_v49 = vpop.permute.xlu1 %880 }
 0xfde   :  { %v883_v51 = vadd.f32 %v881_v49, %v873_v48  ;;  %v892_v52 = vpop.permute.xlu0 %891 }
 0xfdf   :  { %v894_v53 = vadd.f32 %v892_v52, %v884_v50 }
 0xfe0   :  { %1483 = vtanh.f32 %v883_v51 }
 0xfe1   :  { %1485 = vtanh.f32 %v894_v53 }
 0xfea   :  { %v1484_v54 = vpop.eup %1483 }
 0xfeb   :  { %v1486_v55 = vpop.eup %1485  ;;  %897 = vrot.lane.b32.xlu1 %v1484_v54, %s1619_s29 }
 0xfec   :  { %903 = vrot.lane.b32.xlu0 %v1486_v55, %s1619_s29 }
0x105d   :  { %v898_v56 = vpop.permute.xlu1 %897 }
0x105e   :  { %v900_v57 = vmul.f32 %v1480_v42, %v898_v56  ;;  %v904_v58 = vpop.permute.xlu0 %903 }
0x105f   :  { %v906_v59 = vmul.f32 %v1482_v44, %v904_v58 }
0x1060   :  { %908 = vrot.lane.b32.xlu1 %v900_v57, %s1618_s28 }
0x1061   :  { %912 = vrot.lane.b32.xlu0 %v906_v59, %s1625_s2 }
0x10d2   :  { %v909_v60 = vpop.permute.xlu1 %908 }
0x10d3   :  { %v913_v61 = vpop.permute.xlu0 %912 }
0x10d4   :  { %v915_v62 = vsel %vm229_vm2, %v909_v60, %v913_v61 }
0x10d5   :  { %1246 = vmatmul.mubr.msk.f32.vlgmr.msra.gmra.mrb[6].mxu0 %vm89_vm1, %v915_v62 }
0x11a8   :  { %v985_v2 = vpop.f32.mrb[6].mxu0 }
0x11a9   :  { %v992_v3 = vadd.f32 %v991_v63, %v985_v2  ;;  %v987_v5 = vpop.f32.mrb[7].mxu0 }
0x11aa   :  { %v995_v6 = vadd.f32 %v994_v1, %v987_v5 }
0x11ab   :  { %1487 = vtanh.f32 %v992_v3  ;;  %v1247_v11 = vmul.f32 -1.442695, %v992_v3 }
0x11ac   :  { %1489 = vtanh.f32 %v995_v6  ;;  %v1248_v12 = vmul.f32 -1.442695, %v995_v6 }
0x11ad   :  { %1491 = vpow2.f32 %v1247_v11 }
0x11ae   :  { %1493 = vpow2.f32 %v1248_v12 }
0x11b5   :  { %v1488_v7 = vpop.eup %1487 }
0x11b6   :  { %v1490_v10 = vpop.eup %1489  ;;  %1012 = vrot.lane.b32.xlu1 %v1488_v7, %s1619_s29 }
0x11b7   :  { %1023 = vrot.lane.b32.xlu0 %v1490_v10, %s1619_s29  ;;  %v1492_v13 = vpop.eup %1491 }
0x11b8   :  { %v1494_v16 = vpop.eup %1493  ;;  %v999_v17 = vadd.f32 1.0, %v1492_v13 }
0x11b9   :  { %v1005_v18 = vadd.f32 1.0, %v1494_v16 }
0x11ba   :  { %1495 = vrcp.f32 %v999_v17 }
0x11bb   :  { %1497 = vrcp.f32 %v1005_v18 }
0x11c4   :  { %v1496_v19 = vpop.eup %1495 }
0x11c5   :  { %v1498_v23 = vpop.eup %1497  ;;  %v1010_v28 = vmul.f32 %v1496_v19, %v883_v51 }
0x11c6   :  { %v1021_v30 = vmul.f32 %v1498_v23, %v894_v53 }
0x1228   :  { %v1013_v20 = vpop.permute.xlu1 %1012 }
0x1229   :  { %v1015_v24 = vmul.f32 %v1496_v19, %v1013_v20  ;;  %v1024_v26 = vpop.permute.xlu0 %1023 }
0x122a   :  { %v1026_v27 = vmul.f32 %v1498_v23, %v1024_v26 }
0x122b   :  { %1017 = vrot.lane.b32.xlu1 %v1015_v24, %s1619_s29 }
0x122c   :  { %1028 = vrot.lane.b32.xlu0 %v1026_v27, %s1619_s29 }
0x129d   :  { %v1018_v29 = vpop.permute.xlu1 %1017 }
0x129e   :  { %v1020_v31 = vadd.f32 %v1018_v29, %v1010_v28  ;;  %v1029_v32 = vpop.permute.xlu0 %1028 }
0x129f   :  { %v1031_v33 = vadd.f32 %v1029_v32, %v1021_v30 }
0x12a0   :  { %1499 = vtanh.f32 %v1020_v31 }
0x12a1   :  { %1501 = vtanh.f32 %v1031_v33 }
0x12aa   :  { %v1500_v4 = vpop.eup %1499 }
0x12ab   :  { %v1502_v34 = vpop.eup %1501  ;;  %1034 = vrot.lane.b32.xlu1 %v1500_v4, %s1619_s29 }
0x12ac   :  { %1040 = vrot.lane.b32.xlu0 %v1502_v34, %s1619_s29 }
0x131d   :  { %v1035_v35 = vpop.permute.xlu1 %1034 }
0x131e   :  { %v1037_v36 = vmul.f32 %v1496_v19, %v1035_v35  ;;  %v1041_v37 = vpop.permute.xlu0 %1040 }
0x131f   :  { %v1043_v38 = vmul.f32 %v1498_v23, %v1041_v37 }
0x1320   :  { %1045 = vrot.lane.b32.xlu1 %v1037_v36, %s1618_s28 }
0x1321   :  { %1049 = vrot.lane.b32.xlu0 %v1043_v38, %s1625_s2 }
0x1392   :  { %v1046_v39 = vpop.permute.xlu1 %1045 }
0x1393   :  { %v1050_v40 = vpop.permute.xlu0 %1049 }
0x1394   :  { %v1052_v8 = vsel %vm229_vm2, %v1046_v39, %v1050_v40 }
0x1395   :  { %1249 = vmatmul.mubr.msk.f32.vlgmr.msra.gmra.mrb[6].mxu1 %vm89_vm1, %v1052_v8 }
0x1468   :  { %v1122_v14 = vpop.f32.mrb[6].mxu1 }
0x1469   :  { %v1129_v15 = vadd.f32 %v1128_v0, %v1122_v14  ;;  %v1124_v21 = vpop.f32.mrb[7].mxu1 }
0x146a   :  { %v1131_v22 = vadd.f32 %v1130_v9, %v1124_v21 }
0x146b   :  { %1503 = vtanh.f32 %v1129_v15  ;;  %v1250_v42 = vmul.f32 -1.442695, %v1129_v15 }
0x146c   :  { %1505 = vtanh.f32 %v1131_v22  ;;  %v1251_v43 = vmul.f32 -1.442695, %v1131_v22 }
0x146d   :  { %1507 = vpow2.f32 %v1250_v42 }
0x146e   :  { %1509 = vpow2.f32 %v1251_v43 }
0x1475   :  { %v1504_v25 = vpop.eup %1503 }
0x1476   :  { %v1506_v41 = vpop.eup %1505  ;;  %1148 = vrot.lane.b32.xlu1 %v1504_v25, %s1619_s29 }
0x1477   :  { %1159 = vrot.lane.b32.xlu0 %v1506_v41, %s1619_s29  ;;  %v1508_v44 = vpop.eup %1507 }
0x1478   :  { %v1510_v45 = vpop.eup %1509  ;;  %v1135_v46 = vadd.f32 1.0, %v1508_v44 }
0x1479   :  { %v1141_v47 = vadd.f32 1.0, %v1510_v45 }
0x147a   :  { %1511 = vrcp.f32 %v1135_v46 }
0x147b   :  { %1513 = vrcp.f32 %v1141_v47 }
0x1484   :  { %v1512_v48 = vpop.eup %1511 }
0x1485   :  { %v1514_v50 = vpop.eup %1513  ;;  %v1146_v54 = vmul.f32 %v1512_v48, %v1020_v31 }
0x1486   :  { %v1157_v56 = vmul.f32 %v1514_v50, %v1031_v33 }
0x14e8   :  { %v1149_v49 = vpop.permute.xlu1 %1148 }
0x14e9   :  { %v1151_v51 = vmul.f32 %v1512_v48, %v1149_v49  ;;  %v1160_v52 = vpop.permute.xlu0 %1159 }
0x14ea   :  { %v1162_v53 = vmul.f32 %v1514_v50, %v1160_v52 }
0x14eb   :  { %1153 = vrot.lane.b32.xlu1 %v1151_v51, %s1619_s29 }
0x14ec   :  { %1164 = vrot.lane.b32.xlu0 %v1162_v53, %s1619_s29 }
0x155d   :  { %v1154_v55 = vpop.permute.xlu1 %1153 }
0x155e   :  { %v1156_v57 = vadd.f32 %v1154_v55, %v1146_v54  ;;  %v1165_v58 = vpop.permute.xlu0 %1164 }
0x155f   :  { %v1167_v59 = vadd.f32 %v1165_v58, %v1157_v56 }
0x1560   :  { %1515 = vtanh.f32 %v1156_v57 }
0x1561   :  { %1517 = vtanh.f32 %v1167_v59 }
0x156a   :  { %v1516_v60 = vpop.eup %1515 }
0x156b   :  { %v1518_v61 = vpop.eup %1517  ;;  %1170 = vrot.lane.b32.xlu1 %v1516_v60, %s1619_s29 }
0x156c   :  { %1176 = vrot.lane.b32.xlu0 %v1518_v61, %s1619_s29  ;;  %s1626_s29 = smov [#allocation10]  }
0x156d   :  { %s1214_s1 = sshll.u32 %s1626_s29, 4  ;;  %s1215_s1 = int_to_ptr.vmem [resolvable:$true] %s1214_s1 }
0x156e   :  { %p1593_p3 = scmp.lt.s32.totalorder %s1215_s1, %s1215_s1 }
0x15dd   :  { %v1171_v62 = vpop.permute.xlu1 %1170 }
0x15de   :  { %v1173_v63 = vmul.f32 %v1512_v48, %v1171_v62  ;;  %v1177_v1 = vpop.permute.xlu0 %1176 }
0x15df   :  { %v1179_v2 = vmul.f32 %v1514_v50, %v1177_v1 }
0x15e0   :  { %1181 = vrot.lane.b32.xlu1 %v1173_v63, %s1618_s28  ;;  %s1588_s28 = scalar_lea.vmem %s1215_s1, 32 }
0x15e1   :  { %1185 = vrot.lane.b32.xlu0 %v1179_v2, %s1625_s2  ;;  %p1589_p2 = scmp.ne.s32.totalorder %s1215_s1, %s1588_s28  ;;  %p1594_p4 = scmp.lt.s32.totalorder %s1588_s28, %s1588_s28 }
0x15e3   :  { %p1595_p5 = por %p1594_p4, %p1593_p3 }
0x15e5   :  { %1192 = vrot.lane.b32.xlu0 %v1156_v57, %s1625_s2  ;;  %p1596_p6 = pnand %p1595_p5, %p1589_p2 }
0x1652   :  { %v1182_v3 = vpop.permute.xlu1 %1181 }
0x1653   :  { %v1186_v5 = vpop.permute.xlu0 %1185 }
0x1654   :  { %v1188_v6 = vsel %vm229_vm2, %v1182_v3, %v1186_v5 }
0x1655   :  { %1203 = vrot.lane.b32.xlu1 %v1188_v6, %s1625_s2  ;;  %1190 = vst.msk [vmem:[#allocation2] sm:$0x3] %vm68_vm0, %v1188_v6 }
0x1657   :  { %v1193_v7 = vpop.permute.xlu0 %1192 }
0x1658   :  { %1196 = vst.msk [vmem:[#allocation3] sm:$0x3] %vm1195_vm3, %v1193_v7 }
0x1659   :  { %1198 = vst.msk [vmem:[#allocation3] sm:$0x3] %vm1197_vm4, %v1167_v59 }
0x16c7   :  { %v1204_v10 = vpop.permute.xlu1 %1203 }
0x16c8   :  { %v1206_v11 = vadd.f32 %v1204_v10, %v1188_v6 }
0x16ca   :  { %1207 = vst.msk [vmem:[#allocation10] sm:$0x3] %vm1195_vm3, %v1206_v11 }
0x16cb   :  { %1599 = shalt.err (!%p1596_p6)
}
0x16cc   :  { %s1600_s6 = scalar_lea.hbm %s1898_s3, 32 }
0x16cd   :  { %p1601_p7 = scmp.ne.s32.totalorder %s1898_s3, %s1600_s6  ;;  %p1604_p8 = scmp.lt.u32.totalorder %s1600_s6, %s1898_s3 }
0x16cf   :  { %p1606_p9 = pnand %p1604_p8, %p1601_p7 }
0x16d1   :  { %1609 = shalt.err (!%p1606_p9)
}
0x16d2   :  { %1217 = dma.vmem_to_hbm [thread:$0]  %s1215_s1, 32, %s1898_s3, [#allocation6]  }
0x16d3   :  { %1614 = dma.done.wait [#allocation6], 32  }
0x16d4   :  { %1615 = vsyncadd [#allocation6], 4294967264 }
0x16d5   :  { %1221 = vsyncpa [#allocation5], 1 }
0x16d6   :  { %1222 = vsyncpa [#allocation8], 1 }
0x16d7   :  { %1223 = vsyncpa [#allocation6], 1 }

</bundles_post_ra>
